<compile_context>
chip_gen: v7x
topology: tpu7x:2x2x1
jax: 0.10.0
libtpu: 0.0.40
codegen_flags: <defaults>
</compile_context>

<pallas_src>
import functools
import math

import jax
import jax.numpy as jnp
from jax.experimental import pallas as pl
from jax.experimental.pallas import tpu as pltpu


def _layer_norm(x, gamma, beta, eps=1e-5):
    mean = jnp.mean(x, axis=-1, keepdims=True)
    var = jnp.mean((x - mean) ** 2, axis=-1, keepdims=True)
    xhat = (x - mean) * jax.lax.rsqrt(var + eps)
    return xhat * gamma + beta


def encoder_kernel(x_ref,
                   wq_ref, bq_ref, wk_ref, bk_ref, wv_ref, bv_ref, wo_ref, bo_ref,
                   g1_ref, be1_ref,
                   w1_ref, b1_ref, w2_ref, b2_ref,
                   g2_ref, be2_ref,
                   out_ref, score_ref, *, h, q, v, tb, k_seq):
    xf = x_ref[...]                                  # (TB*K, d_model) flattened row slab
    scale = 1.0 / math.sqrt(k_seq)                   # tst repo scales by sqrt(seq len)

    # Fused Q/K/V projections: one big matmul each over the whole (TB*K) row slab.
    # 1/sqrt(K) is folded into Q here (cheaper than scaling the (K,K) score matrices).
    Q = (jnp.dot(xf, wq_ref[...], preferred_element_type=jnp.float32) + bq_ref[...]) * scale
    Kx = jnp.dot(xf, wk_ref[...], preferred_element_type=jnp.float32) + bk_ref[...]
    V = jnp.dot(xf, wv_ref[...], preferred_element_type=jnp.float32) + bv_ref[...]

    wo = wo_ref[...]                                 # (h*v, d_model)

    score_parts = []
    sa = None
    for hh in range(h):                              # static unroll; h is small
        qh = Q[:, hh * q:(hh + 1) * q].reshape(tb, k_seq, q)
        kh = Kx[:, hh * q:(hh + 1) * q].reshape(tb, k_seq, q)
        vh = V[:, hh * v:(hh + 1) * v].reshape(tb, k_seq, v)

        s = jnp.einsum('bkd,bjd->bkj', qh, kh,
                       preferred_element_type=jnp.float32)          # (TB, K, K)
        s = s - jnp.max(s, axis=-1, keepdims=True)
        e = jnp.exp(s)
        p = e * pl.reciprocal(jnp.sum(e, axis=-1, keepdims=True), approx=False)
        score_parts.append(p)

        ah = jnp.einsum('bkj,bjd->bkd', p, vh,
                        preferred_element_type=jnp.float32)          # (TB, K, v)
        # Accumulate the output projection per head -> no concat of head outputs needed.
        contrib = jnp.dot(ah.reshape(tb * k_seq, v), wo[hh * v:(hh + 1) * v, :],
                          preferred_element_type=jnp.float32)         # (TB*K, d_model)
        sa = contrib if sa is None else sa + contrib

    # Single, lane-wider store of all heads' attention probabilities.
    score_ref[...] = jnp.concatenate(score_parts, axis=-1)            # (TB, K, h*K)

    sa = sa + bo_ref[...]

    # residual + LayerNorm1   (dropout == identity)
    x1 = _layer_norm(sa + xf, g1_ref[...], be1_ref[...])

    # Position-wise feed-forward on the whole row slab.
    hid = jnp.maximum(
        jnp.dot(x1, w1_ref[...], preferred_element_type=jnp.float32) + b1_ref[...], 0.0)
    ff = jnp.dot(hid, w2_ref[...], preferred_element_type=jnp.float32) + b2_ref[...]

    # residual + LayerNorm2   (dropout == identity)
    out_ref[...] = _layer_norm(ff + x1, g2_ref[...], be2_ref[...])


def _pick_tb(B, K, max_rows=512):
    """Largest divisor of B whose row slab (TB*K) is sublane-aligned and modest."""
    tb = 1
    for t in range(1, B + 1):
        if B % t == 0 and (t * K) % 8 == 0 and t * K <= max_rows:
            tb = t
    if (tb * K) % 8 != 0:
        # Fall back to a single full-array block (block_shape == array shape is always legal).
        tb = B
    return tb


def encoder_forward(x, params, *, h, q, v):
    B, K, d_model = x.shape
    x2 = x.reshape(B * K, d_model)

    tb = _pick_tb(B, K)
    grid = (B // tb,)

    kern = functools.partial(encoder_kernel, h=h, q=q, v=v, tb=tb, k_seq=K)

    order = ['wq', 'bq', 'wk', 'bk', 'wv', 'bv', 'wo', 'bo',
             'g1', 'be1', 'w1', 'b1', 'w2', 'b2', 'g2', 'be2']
    args = [x2]
    in_specs = [pl.BlockSpec((tb * K, d_model), lambda b: (b, 0))]
    for name in order:
        p = params[name]
        # Constant index map: weights stay VMEM-resident across the whole grid.
        in_specs.append(pl.BlockSpec(p.shape, lambda b: (0, 0)))
        args.append(p)

    out_shapes = (jax.ShapeDtypeStruct((B * K, d_model), jnp.float32),
                  jax.ShapeDtypeStruct((B, K, h * K), jnp.float32))
    out_specs = (pl.BlockSpec((tb * K, d_model), lambda b: (b, 0)),
                 pl.BlockSpec((tb, K, h * K), lambda b: (b, 0, 0)))

    out2, scores_raw = pl.pallas_call(
        kern,
        out_shape=out_shapes,
        grid=grid,
        in_specs=in_specs,
        out_specs=out_specs,
        compiler_params=pltpu.CompilerParams(
            dimension_semantics=("parallel",),           # batch blocks are independent
            vmem_limit_bytes=64 * 1024 * 1024),
    )(*args)

    out = out2.reshape(B, K, d_model)
    # (B, K, h*K) -> (h*B, K, K): head-major, matches torch.cat(chunk(h, dim=0)) ordering.
    scores = jnp.transpose(scores_raw.reshape(B, K, h, K), (2, 0, 1, 3)).reshape(h * B, K, K)
    return out, scores


def reference_forward(x, p, *, h, q, v):
    """Pure-JAX reference replicating the PyTorch Encoder (eval mode)."""
    B, K, d = x.shape
    scale = 1.0 / math.sqrt(K)
    Q = x @ p['wq'] + p['bq']
    Kx = x @ p['wk'] + p['bk']
    V = x @ p['wv'] + p['bv']
    heads, scores = [], []
    for hh in range(h):
        qh = Q[..., hh * q:(hh + 1) * q]
        kh = Kx[..., hh * q:(hh + 1) * q]
        vh = V[..., hh * v:(hh + 1) * v]
        s = jnp.einsum('bkd,bjd->bkj', qh, kh) * scale
        pmat = jax.nn.softmax(s, axis=-1)
        scores.append(pmat)
        heads.append(jnp.einsum('bkj,bjd->bkd', pmat, vh))
    attn = jnp.concatenate(heads, axis=-1)
    sa = attn @ p['wo'] + p['bo']

    def ln(t, g, b):
        m = jnp.mean(t, axis=-1, keepdims=True)
        var = jnp.mean((t - m) ** 2, axis=-1, keepdims=True)
        return (t - m) * jax.lax.rsqrt(var + 1e-5) * g + b

    x1 = ln(sa + x, p['g1'], p['be1'])
    ff = jnp.maximum(x1 @ p['w1'] + p['b1'], 0.0) @ p['w2'] + p['b2']
    out = ln(ff + x1, p['g2'], p['be2'])
    return out, jnp.concatenate(scores, axis=0)


def init_params(key, d_model, q, v, h, d_ff):
    ks = jax.random.split(key, 8)
    sc = 0.1

    def bias2d(k, n):
        return sc * jax.random.normal(k, (1, n), jnp.float32)

    params = {
        'wq': sc * jax.random.normal(ks[0], (d_model, q * h), jnp.float32),
        'bq': bias2d(ks[1], q * h),
        'wk': sc * jax.random.normal(ks[2], (d_model, q * h), jnp.float32),
        'bk': bias2d(ks[3], q * h),
        'wv': sc * jax.random.normal(ks[4], (d_model, v * h), jnp.float32),
        'bv': bias2d(ks[5], v * h),
        'wo': sc * jax.random.normal(ks[6], (h * v, d_model), jnp.float32),
        'bo': bias2d(ks[7], d_model),
        'g1': jnp.ones((1, d_model), jnp.float32),
        'be1': jnp.zeros((1, d_model), jnp.float32),
        'w1': sc * jax.random.normal(jax.random.fold_in(key, 100), (d_model, d_ff), jnp.float32),
        'b1': sc * jax.random.normal(jax.random.fold_in(key, 101), (1, d_ff), jnp.float32),
        'w2': sc * jax.random.normal(jax.random.fold_in(key, 102), (d_ff, d_model), jnp.float32),
        'b2': sc * jax.random.normal(jax.random.fold_in(key, 103), (1, d_model), jnp.float32),
        'g2': jnp.ones((1, d_model), jnp.float32),
        'be2': jnp.zeros((1, d_model), jnp.float32),
    }
    return params


if __name__ == "__main__":
    B, K, d_model = 2, 8, 32
    q, v, h = 8, 8, 4
    d_ff = 64  # (repo default is 2048; kept small for the synthetic example)

    key = jax.random.PRNGKey(0)
    kx, kp = jax.random.split(key)
    x = jax.random.normal(kx, (B, K, d_model), jnp.float32)
    params = init_params(kp, d_model, q, v, h, d_ff)

    out, scores = encoder_forward(x, params, h=h, q=q, v=v)
    out = jax.block_until_ready(out)
    scores = jax.block_until_ready(scores)

    ref_out, ref_scores = reference_forward(x, params, h=h, q=q, v=v)
    assert out.shape == (B, K, d_model)
    assert scores.shape == (h * B, K, K)
    assert jnp.allclose(out, ref_out, rtol=1e-4, atol=1e-4)
    assert jnp.allclose(scores, ref_scores, rtol=1e-4, atol=1e-4)

    print("KERNEL_OK")
</pallas_src>

<mosaic_0001>
module attributes {stable_mosaic.version = 11 : i64} {
  func.func @encoder_kernel(%arg0: i32, %arg1: memref<16x32xf32, #tpu.memory_space<vmem>>, %arg2: memref<32x32xf32, #tpu.memory_space<vmem>>, %arg3: memref<1x32xf32, #tpu.memory_space<vmem>>, %arg4: memref<32x32xf32, #tpu.memory_space<vmem>>, %arg5: memref<1x32xf32, #tpu.memory_space<vmem>>, %arg6: memref<32x32xf32, #tpu.memory_space<vmem>>, %arg7: memref<1x32xf32, #tpu.memory_space<vmem>>, %arg8: memref<32x32xf32, #tpu.memory_space<vmem>>, %arg9: memref<1x32xf32, #tpu.memory_space<vmem>>, %arg10: memref<1x32xf32, #tpu.memory_space<vmem>>, %arg11: memref<1x32xf32, #tpu.memory_space<vmem>>, %arg12: memref<32x64xf32, #tpu.memory_space<vmem>>, %arg13: memref<1x64xf32, #tpu.memory_space<vmem>>, %arg14: memref<64x32xf32, #tpu.memory_space<vmem>>, %arg15: memref<1x32xf32, #tpu.memory_space<vmem>>, %arg16: memref<1x32xf32, #tpu.memory_space<vmem>>, %arg17: memref<1x32xf32, #tpu.memory_space<vmem>>, %arg18: memref<16x32xf32, #tpu.memory_space<vmem>>, %arg19: memref<2x8x32xf32, #tpu.memory_space<vmem>>) attributes {dimension_semantics = [#tpu.dimension_semantics<parallel>], iteration_bounds = array<i64: 1>, scalar_prefetch = 0 : i64, scratch_operands = 0 : i64, tpu.core_type = #tpu.core_type<tc>, window_params = [{transform_indices = @transform_0, window_bounds = array<i64: 16, 32>}, {pipeline_mode = #tpu.pipeline_mode<synchronous>, transform_indices = @transform_1, window_bounds = array<i64: 32, 32>}, {pipeline_mode = #tpu.pipeline_mode<synchronous>, transform_indices = @transform_2, window_bounds = array<i64: 1, 32>}, {pipeline_mode = #tpu.pipeline_mode<synchronous>, transform_indices = @transform_3, window_bounds = array<i64: 32, 32>}, {pipeline_mode = #tpu.pipeline_mode<synchronous>, transform_indices = @transform_4, window_bounds = array<i64: 1, 32>}, {pipeline_mode = #tpu.pipeline_mode<synchronous>, transform_indices = @transform_5, window_bounds = array<i64: 32, 32>}, {pipeline_mode = #tpu.pipeline_mode<synchronous>, transform_indices = @transform_6, window_bounds = array<i64: 1, 32>}, {pipeline_mode = #tpu.pipeline_mode<synchronous>, transform_indices = @transform_7, window_bounds = array<i64: 32, 32>}, {pipeline_mode = #tpu.pipeline_mode<synchronous>, transform_indices = @transform_8, window_bounds = array<i64: 1, 32>}, {pipeline_mode = #tpu.pipeline_mode<synchronous>, transform_indices = @transform_9, window_bounds = array<i64: 1, 32>}, {pipeline_mode = #tpu.pipeline_mode<synchronous>, transform_indices = @transform_10, window_bounds = array<i64: 1, 32>}, {pipeline_mode = #tpu.pipeline_mode<synchronous>, transform_indices = @transform_11, window_bounds = array<i64: 32, 64>}, {pipeline_mode = #tpu.pipeline_mode<synchronous>, transform_indices = @transform_12, window_bounds = array<i64: 1, 64>}, {pipeline_mode = #tpu.pipeline_mode<synchronous>, transform_indices = @transform_13, window_bounds = array<i64: 64, 32>}, {pipeline_mode = #tpu.pipeline_mode<synchronous>, transform_indices = @transform_14, window_bounds = array<i64: 1, 32>}, {pipeline_mode = #tpu.pipeline_mode<synchronous>, transform_indices = @transform_15, window_bounds = array<i64: 1, 32>}, {pipeline_mode = #tpu.pipeline_mode<synchronous>, transform_indices = @transform_16, window_bounds = array<i64: 1, 32>}, {transform_indices = @transform_17, window_bounds = array<i64: 16, 32>}, {transform_indices = @transform_18, window_bounds = array<i64: 2, 8, 32>}]} {
    %c0 = arith.constant 0 : index
    %c0_0 = arith.constant 0 : index
    %0 = vector.load %arg1[%c0, %c0_0] : memref<16x32xf32, #tpu.memory_space<vmem>>, vector<16x32xf32>
    %c0_1 = arith.constant 0 : index
    %c0_2 = arith.constant 0 : index
    %1 = vector.load %arg2[%c0_1, %c0_2] : memref<32x32xf32, #tpu.memory_space<vmem>>, vector<32x32xf32>
    %cst = arith.constant dense<0.000000e+00> : vector<16x32xf32>
    %2 = tpu.matmul %0, %1, %cst {dimension_numbers = #tpu.dot_dimension_numbers<[1], [0], [0], [1], [0, 0, 1, 1], [], []>} : vector<16x32xf32>, vector<32x32xf32>, vector<16x32xf32> -> vector<16x32xf32>
    %c0_3 = arith.constant 0 : index
    %c0_4 = arith.constant 0 : index
    %3 = vector.load %arg3[%c0_3, %c0_4] : memref<1x32xf32, #tpu.memory_space<vmem>>, vector<1x32xf32>
    %4 = vector.broadcast %3 : vector<1x32xf32> to vector<16x32xf32>
    %5 = arith.addf %2, %4 : vector<16x32xf32>
    %cst_5 = arith.constant 0.353553385 : f32
    %6 = vector.broadcast %cst_5 : f32 to vector<16x32xf32>
    %7 = arith.mulf %5, %6 : vector<16x32xf32>
    %c0_6 = arith.constant 0 : index
    %c0_7 = arith.constant 0 : index
    %8 = vector.load %arg4[%c0_6, %c0_7] : memref<32x32xf32, #tpu.memory_space<vmem>>, vector<32x32xf32>
    %cst_8 = arith.constant dense<0.000000e+00> : vector<16x32xf32>
    %9 = tpu.matmul %0, %8, %cst_8 {dimension_numbers = #tpu.dot_dimension_numbers<[1], [0], [0], [1], [0, 0, 1, 1], [], []>} : vector<16x32xf32>, vector<32x32xf32>, vector<16x32xf32> -> vector<16x32xf32>
    %c0_9 = arith.constant 0 : index
    %c0_10 = arith.constant 0 : index
    %10 = vector.load %arg5[%c0_9, %c0_10] : memref<1x32xf32, #tpu.memory_space<vmem>>, vector<1x32xf32>
    %11 = vector.broadcast %10 : vector<1x32xf32> to vector<16x32xf32>
    %12 = arith.addf %9, %11 : vector<16x32xf32>
    %c0_11 = arith.constant 0 : index
    %c0_12 = arith.constant 0 : index
    %13 = vector.load %arg6[%c0_11, %c0_12] : memref<32x32xf32, #tpu.memory_space<vmem>>, vector<32x32xf32>
    %cst_13 = arith.constant dense<0.000000e+00> : vector<16x32xf32>
    %14 = tpu.matmul %0, %13, %cst_13 {dimension_numbers = #tpu.dot_dimension_numbers<[1], [0], [0], [1], [0, 0, 1, 1], [], []>} : vector<16x32xf32>, vector<32x32xf32>, vector<16x32xf32> -> vector<16x32xf32>
    %c0_14 = arith.constant 0 : index
    %c0_15 = arith.constant 0 : index
    %15 = vector.load %arg7[%c0_14, %c0_15] : memref<1x32xf32, #tpu.memory_space<vmem>>, vector<1x32xf32>
    %16 = vector.broadcast %15 : vector<1x32xf32> to vector<16x32xf32>
    %17 = arith.addf %14, %16 : vector<16x32xf32>
    %c0_16 = arith.constant 0 : index
    %c0_17 = arith.constant 0 : index
    %18 = vector.load %arg8[%c0_16, %c0_17] : memref<32x32xf32, #tpu.memory_space<vmem>>, vector<32x32xf32>
    %19 = vector.extract_strided_slice %7 {offsets = [0, 0], sizes = [16, 8], strides = [1, 1]} : vector<16x32xf32> to vector<16x8xf32>
    %20 = vector.shape_cast %19 : vector<16x8xf32> to vector<2x8x8xf32>
    %21 = vector.extract_strided_slice %12 {offsets = [0, 0], sizes = [16, 8], strides = [1, 1]} : vector<16x32xf32> to vector<16x8xf32>
    %22 = vector.shape_cast %21 : vector<16x8xf32> to vector<2x8x8xf32>
    %23 = vector.extract_strided_slice %17 {offsets = [0, 0], sizes = [16, 8], strides = [1, 1]} : vector<16x32xf32> to vector<16x8xf32>
    %24 = vector.shape_cast %23 : vector<16x8xf32> to vector<2x8x8xf32>
    "tpu.trace_start"() <{level = 10 : i32, message = "bkd,bjd->bkj"}> : () -> ()
    %cst_18 = arith.constant dense<0.000000e+00> : vector<2x8x8xf32>
    %25 = tpu.matmul %20, %22, %cst_18 {dimension_numbers = #tpu.dot_dimension_numbers<[2], [2], [1], [1], [0, 0, 0, 1, 1, 1], [0], [0]>} : vector<2x8x8xf32>, vector<2x8x8xf32>, vector<2x8x8xf32> -> vector<2x8x8xf32>
    "tpu.trace_stop"() : () -> ()
    %cst_19 = arith.constant dense<0xFF800000> : vector<2x8xf32>
    %26 = vector.multi_reduction <maximumf>, %25, %cst_19 [2] : vector<2x8x8xf32> to vector<2x8xf32>
    %27 = vector.shape_cast %26 : vector<2x8xf32> to vector<2x8x1xf32>
    %28 = vector.broadcast %27 : vector<2x8x1xf32> to vector<2x8x8xf32>
    %29 = arith.subf %25, %28 : vector<2x8x8xf32>
    %30 = math.exp %29 : vector<2x8x8xf32>
    %cst_20 = arith.constant dense<0.000000e+00> : vector<2x8xf32>
    %31 = vector.multi_reduction <add>, %30, %cst_20 [2] : vector<2x8x8xf32> to vector<2x8xf32>
    %32 = vector.shape_cast %31 : vector<2x8xf32> to vector<2x8x1xf32>
    %33 = tpu.reciprocal %32 : vector<2x8x1xf32> -> vector<2x8x1xf32>
    %34 = vector.broadcast %33 : vector<2x8x1xf32> to vector<2x8x8xf32>
    %35 = arith.mulf %30, %34 : vector<2x8x8xf32>
    "tpu.trace_start"() <{level = 10 : i32, message = "bkj,bjd->bkd"}> : () -> ()
    %cst_21 = arith.constant dense<0.000000e+00> : vector<2x8x8xf32>
    %36 = tpu.matmul %35, %24, %cst_21 {dimension_numbers = #tpu.dot_dimension_numbers<[2], [1], [1], [2], [0, 0, 0, 1, 1, 2], [0], [0]>} : vector<2x8x8xf32>, vector<2x8x8xf32>, vector<2x8x8xf32> -> vector<2x8x8xf32>
    "tpu.trace_stop"() : () -> ()
    %37 = vector.shape_cast %36 : vector<2x8x8xf32> to vector<16x8xf32>
    %38 = vector.extract_strided_slice %18 {offsets = [0, 0], sizes = [8, 32], strides = [1, 1]} : vector<32x32xf32> to vector<8x32xf32>
    %cst_22 = arith.constant dense<0.000000e+00> : vector<16x32xf32>
    %39 = tpu.matmul %37, %38, %cst_22 {dimension_numbers = #tpu.dot_dimension_numbers<[1], [0], [0], [1], [0, 0, 1, 1], [], []>} : vector<16x8xf32>, vector<8x32xf32>, vector<16x32xf32> -> vector<16x32xf32>
    %40 = vector.extract_strided_slice %7 {offsets = [0, 8], sizes = [16, 8], strides = [1, 1]} : vector<16x32xf32> to vector<16x8xf32>
    %41 = vector.shape_cast %40 : vector<16x8xf32> to vector<2x8x8xf32>
    %42 = vector.extract_strided_slice %12 {offsets = [0, 8], sizes = [16, 8], strides = [1, 1]} : vector<16x32xf32> to vector<16x8xf32>
    %43 = vector.shape_cast %42 : vector<16x8xf32> to vector<2x8x8xf32>
    %44 = vector.extract_strided_slice %17 {offsets = [0, 8], sizes = [16, 8], strides = [1, 1]} : vector<16x32xf32> to vector<16x8xf32>
    %45 = vector.shape_cast %44 : vector<16x8xf32> to vector<2x8x8xf32>
    "tpu.trace_start"() <{level = 10 : i32, message = "bkd,bjd->bkj"}> : () -> ()
    %cst_23 = arith.constant dense<0.000000e+00> : vector<2x8x8xf32>
    %46 = tpu.matmul %41, %43, %cst_23 {dimension_numbers = #tpu.dot_dimension_numbers<[2], [2], [1], [1], [0, 0, 0, 1, 1, 1], [0], [0]>} : vector<2x8x8xf32>, vector<2x8x8xf32>, vector<2x8x8xf32> -> vector<2x8x8xf32>
    "tpu.trace_stop"() : () -> ()
    %cst_24 = arith.constant dense<0xFF800000> : vector<2x8xf32>
    %47 = vector.multi_reduction <maximumf>, %46, %cst_24 [2] : vector<2x8x8xf32> to vector<2x8xf32>
    %48 = vector.shape_cast %47 : vector<2x8xf32> to vector<2x8x1xf32>
    %49 = vector.broadcast %48 : vector<2x8x1xf32> to vector<2x8x8xf32>
    %50 = arith.subf %46, %49 : vector<2x8x8xf32>
    %51 = math.exp %50 : vector<2x8x8xf32>
    %cst_25 = arith.constant dense<0.000000e+00> : vector<2x8xf32>
    %52 = vector.multi_reduction <add>, %51, %cst_25 [2] : vector<2x8x8xf32> to vector<2x8xf32>
    %53 = vector.shape_cast %52 : vector<2x8xf32> to vector<2x8x1xf32>
    %54 = tpu.reciprocal %53 : vector<2x8x1xf32> -> vector<2x8x1xf32>
    %55 = vector.broadcast %54 : vector<2x8x1xf32> to vector<2x8x8xf32>
    %56 = arith.mulf %51, %55 : vector<2x8x8xf32>
    "tpu.trace_start"() <{level = 10 : i32, message = "bkj,bjd->bkd"}> : () -> ()
    %cst_26 = arith.constant dense<0.000000e+00> : vector<2x8x8xf32>
    %57 = tpu.matmul %56, %45, %cst_26 {dimension_numbers = #tpu.dot_dimension_numbers<[2], [1], [1], [2], [0, 0, 0, 1, 1, 2], [0], [0]>} : vector<2x8x8xf32>, vector<2x8x8xf32>, vector<2x8x8xf32> -> vector<2x8x8xf32>
    "tpu.trace_stop"() : () -> ()
    %58 = vector.shape_cast %57 : vector<2x8x8xf32> to vector<16x8xf32>
    %59 = vector.extract_strided_slice %18 {offsets = [8, 0], sizes = [8, 32], strides = [1, 1]} : vector<32x32xf32> to vector<8x32xf32>
    %cst_27 = arith.constant dense<0.000000e+00> : vector<16x32xf32>
    %60 = tpu.matmul %58, %59, %cst_27 {dimension_numbers = #tpu.dot_dimension_numbers<[1], [0], [0], [1], [0, 0, 1, 1], [], []>} : vector<16x8xf32>, vector<8x32xf32>, vector<16x32xf32> -> vector<16x32xf32>
    %61 = arith.addf %39, %60 : vector<16x32xf32>
    %62 = vector.extract_strided_slice %7 {offsets = [0, 16], sizes = [16, 8], strides = [1, 1]} : vector<16x32xf32> to vector<16x8xf32>
    %63 = vector.shape_cast %62 : vector<16x8xf32> to vector<2x8x8xf32>
    %64 = vector.extract_strided_slice %12 {offsets = [0, 16], sizes = [16, 8], strides = [1, 1]} : vector<16x32xf32> to vector<16x8xf32>
    %65 = vector.shape_cast %64 : vector<16x8xf32> to vector<2x8x8xf32>
    %66 = vector.extract_strided_slice %17 {offsets = [0, 16], sizes = [16, 8], strides = [1, 1]} : vector<16x32xf32> to vector<16x8xf32>
    %67 = vector.shape_cast %66 : vector<16x8xf32> to vector<2x8x8xf32>
    "tpu.trace_start"() <{level = 10 : i32, message = "bkd,bjd->bkj"}> : () -> ()
    %cst_28 = arith.constant dense<0.000000e+00> : vector<2x8x8xf32>
    %68 = tpu.matmul %63, %65, %cst_28 {dimension_numbers = #tpu.dot_dimension_numbers<[2], [2], [1], [1], [0, 0, 0, 1, 1, 1], [0], [0]>} : vector<2x8x8xf32>, vector<2x8x8xf32>, vector<2x8x8xf32> -> vector<2x8x8xf32>
    "tpu.trace_stop"() : () -> ()
    %cst_29 = arith.constant dense<0xFF800000> : vector<2x8xf32>
    %69 = vector.multi_reduction <maximumf>, %68, %cst_29 [2] : vector<2x8x8xf32> to vector<2x8xf32>
    %70 = vector.shape_cast %69 : vector<2x8xf32> to vector<2x8x1xf32>
    %71 = vector.broadcast %70 : vector<2x8x1xf32> to vector<2x8x8xf32>
    %72 = arith.subf %68, %71 : vector<2x8x8xf32>
    %73 = math.exp %72 : vector<2x8x8xf32>
    %cst_30 = arith.constant dense<0.000000e+00> : vector<2x8xf32>
    %74 = vector.multi_reduction <add>, %73, %cst_30 [2] : vector<2x8x8xf32> to vector<2x8xf32>
    %75 = vector.shape_cast %74 : vector<2x8xf32> to vector<2x8x1xf32>
    %76 = tpu.reciprocal %75 : vector<2x8x1xf32> -> vector<2x8x1xf32>
    %77 = vector.broadcast %76 : vector<2x8x1xf32> to vector<2x8x8xf32>
    %78 = arith.mulf %73, %77 : vector<2x8x8xf32>
    "tpu.trace_start"() <{level = 10 : i32, message = "bkj,bjd->bkd"}> : () -> ()
    %cst_31 = arith.constant dense<0.000000e+00> : vector<2x8x8xf32>
    %79 = tpu.matmul %78, %67, %cst_31 {dimension_numbers = #tpu.dot_dimension_numbers<[2], [1], [1], [2], [0, 0, 0, 1, 1, 2], [0], [0]>} : vector<2x8x8xf32>, vector<2x8x8xf32>, vector<2x8x8xf32> -> vector<2x8x8xf32>
    "tpu.trace_stop"() : () -> ()
    %80 = vector.shape_cast %79 : vector<2x8x8xf32> to vector<16x8xf32>
    %81 = vector.extract_strided_slice %18 {offsets = [16, 0], sizes = [8, 32], strides = [1, 1]} : vector<32x32xf32> to vector<8x32xf32>
    %cst_32 = arith.constant dense<0.000000e+00> : vector<16x32xf32>
    %82 = tpu.matmul %80, %81, %cst_32 {dimension_numbers = #tpu.dot_dimension_numbers<[1], [0], [0], [1], [0, 0, 1, 1], [], []>} : vector<16x8xf32>, vector<8x32xf32>, vector<16x32xf32> -> vector<16x32xf32>
    %83 = arith.addf %61, %82 : vector<16x32xf32>
    %84 = vector.extract_strided_slice %7 {offsets = [0, 24], sizes = [16, 8], strides = [1, 1]} : vector<16x32xf32> to vector<16x8xf32>
    %85 = vector.shape_cast %84 : vector<16x8xf32> to vector<2x8x8xf32>
    %86 = vector.extract_strided_slice %12 {offsets = [0, 24], sizes = [16, 8], strides = [1, 1]} : vector<16x32xf32> to vector<16x8xf32>
    %87 = vector.shape_cast %86 : vector<16x8xf32> to vector<2x8x8xf32>
    %88 = vector.extract_strided_slice %17 {offsets = [0, 24], sizes = [16, 8], strides = [1, 1]} : vector<16x32xf32> to vector<16x8xf32>
    %89 = vector.shape_cast %88 : vector<16x8xf32> to vector<2x8x8xf32>
    "tpu.trace_start"() <{level = 10 : i32, message = "bkd,bjd->bkj"}> : () -> ()
    %cst_33 = arith.constant dense<0.000000e+00> : vector<2x8x8xf32>
    %90 = tpu.matmul %85, %87, %cst_33 {dimension_numbers = #tpu.dot_dimension_numbers<[2], [2], [1], [1], [0, 0, 0, 1, 1, 1], [0], [0]>} : vector<2x8x8xf32>, vector<2x8x8xf32>, vector<2x8x8xf32> -> vector<2x8x8xf32>
    "tpu.trace_stop"() : () -> ()
    %cst_34 = arith.constant dense<0xFF800000> : vector<2x8xf32>
    %91 = vector.multi_reduction <maximumf>, %90, %cst_34 [2] : vector<2x8x8xf32> to vector<2x8xf32>
    %92 = vector.shape_cast %91 : vector<2x8xf32> to vector<2x8x1xf32>
    %93 = vector.broadcast %92 : vector<2x8x1xf32> to vector<2x8x8xf32>
    %94 = arith.subf %90, %93 : vector<2x8x8xf32>
    %95 = math.exp %94 : vector<2x8x8xf32>
    %cst_35 = arith.constant dense<0.000000e+00> : vector<2x8xf32>
    %96 = vector.multi_reduction <add>, %95, %cst_35 [2] : vector<2x8x8xf32> to vector<2x8xf32>
    %97 = vector.shape_cast %96 : vector<2x8xf32> to vector<2x8x1xf32>
    %98 = tpu.reciprocal %97 : vector<2x8x1xf32> -> vector<2x8x1xf32>
    %99 = vector.broadcast %98 : vector<2x8x1xf32> to vector<2x8x8xf32>
    %100 = arith.mulf %95, %99 : vector<2x8x8xf32>
    "tpu.trace_start"() <{level = 10 : i32, message = "bkj,bjd->bkd"}> : () -> ()
    %cst_36 = arith.constant dense<0.000000e+00> : vector<2x8x8xf32>
    %101 = tpu.matmul %100, %89, %cst_36 {dimension_numbers = #tpu.dot_dimension_numbers<[2], [1], [1], [2], [0, 0, 0, 1, 1, 2], [0], [0]>} : vector<2x8x8xf32>, vector<2x8x8xf32>, vector<2x8x8xf32> -> vector<2x8x8xf32>
    "tpu.trace_stop"() : () -> ()
    %102 = vector.shape_cast %101 : vector<2x8x8xf32> to vector<16x8xf32>
    %103 = vector.extract_strided_slice %18 {offsets = [24, 0], sizes = [8, 32], strides = [1, 1]} : vector<32x32xf32> to vector<8x32xf32>
    %cst_37 = arith.constant dense<0.000000e+00> : vector<16x32xf32>
    %104 = tpu.matmul %102, %103, %cst_37 {dimension_numbers = #tpu.dot_dimension_numbers<[1], [0], [0], [1], [0, 0, 1, 1], [], []>} : vector<16x8xf32>, vector<8x32xf32>, vector<16x32xf32> -> vector<16x32xf32>
    %105 = arith.addf %83, %104 : vector<16x32xf32>
    %106 = tpu.concatenate %35, %56, %78, %100 in 2 : vector<2x8x8xf32>, vector<2x8x8xf32>, vector<2x8x8xf32>, vector<2x8x8xf32> -> vector<2x8x32xf32>
    %c0_38 = arith.constant 0 : index
    %c0_39 = arith.constant 0 : index
    %c0_40 = arith.constant 0 : index
    %107 = vector.load %arg19[%c0_38, %c0_39, %c0_40] : memref<2x8x32xf32, #tpu.memory_space<vmem>>, vector<2x8x32xf32>
    tpu.vector_store %arg19[%c0_38, %c0_39, %c0_40], %106 {strides = array<i32>} : memref<2x8x32xf32, #tpu.memory_space<vmem>>, vector<2x8x32xf32>,
    %c0_41 = arith.constant 0 : index
    %c0_42 = arith.constant 0 : index
    %108 = vector.load %arg9[%c0_41, %c0_42] : memref<1x32xf32, #tpu.memory_space<vmem>>, vector<1x32xf32>
    %109 = vector.broadcast %108 : vector<1x32xf32> to vector<16x32xf32>
    %110 = arith.addf %105, %109 : vector<16x32xf32>
    %111 = arith.addf %110, %0 : vector<16x32xf32>
    %c0_43 = arith.constant 0 : index
    %c0_44 = arith.constant 0 : index
    %112 = vector.load %arg10[%c0_43, %c0_44] : memref<1x32xf32, #tpu.memory_space<vmem>>, vector<1x32xf32>
    %c0_45 = arith.constant 0 : index
    %c0_46 = arith.constant 0 : index
    %113 = vector.load %arg11[%c0_45, %c0_46] : memref<1x32xf32, #tpu.memory_space<vmem>>, vector<1x32xf32>
    %cst_47 = arith.constant dense<0.000000e+00> : vector<16xf32>
    %114 = vector.multi_reduction <add>, %111, %cst_47 [1] : vector<16x32xf32> to vector<16xf32>
    %115 = vector.shape_cast %114 : vector<16xf32> to vector<16x1xf32>
    %cst_48 = arith.constant 3.200000e+01 : f32
    %116 = vector.broadcast %cst_48 : f32 to vector<16x1xf32>
    %117 = arith.divf %115, %116 : vector<16x1xf32>
    %118 = vector.broadcast %117 : vector<16x1xf32> to vector<16x32xf32>
    %119 = arith.subf %111, %118 : vector<16x32xf32>
    %120 = arith.mulf %119, %119 : vector<16x32xf32>
    %cst_49 = arith.constant dense<0.000000e+00> : vector<16xf32>
    %121 = vector.multi_reduction <add>, %120, %cst_49 [1] : vector<16x32xf32> to vector<16xf32>
    %122 = vector.shape_cast %121 : vector<16xf32> to vector<16x1xf32>
    %cst_50 = arith.constant 3.200000e+01 : f32
    %123 = vector.broadcast %cst_50 : f32 to vector<16x1xf32>
    %124 = arith.divf %122, %123 : vector<16x1xf32>
    %125 = vector.broadcast %117 : vector<16x1xf32> to vector<16x32xf32>
    %126 = arith.subf %111, %125 : vector<16x32xf32>
    %cst_51 = arith.constant 9.99999974E-6 : f32
    %127 = vector.broadcast %cst_51 : f32 to vector<16x1xf32>
    %128 = arith.addf %124, %127 : vector<16x1xf32>
    %129 = math.rsqrt %128 : vector<16x1xf32>
    %130 = vector.broadcast %129 : vector<16x1xf32> to vector<16x32xf32>
    %131 = arith.mulf %126, %130 : vector<16x32xf32>
    %132 = vector.broadcast %112 : vector<1x32xf32> to vector<16x32xf32>
    %133 = arith.mulf %131, %132 : vector<16x32xf32>
    %134 = vector.broadcast %113 : vector<1x32xf32> to vector<16x32xf32>
    %135 = arith.addf %133, %134 : vector<16x32xf32>
    %c0_52 = arith.constant 0 : index
    %c0_53 = arith.constant 0 : index
    %136 = vector.load %arg12[%c0_52, %c0_53] : memref<32x64xf32, #tpu.memory_space<vmem>>, vector<32x64xf32>
    %cst_54 = arith.constant dense<0.000000e+00> : vector<16x64xf32>
    %137 = tpu.matmul %135, %136, %cst_54 {dimension_numbers = #tpu.dot_dimension_numbers<[1], [0], [0], [1], [0, 0, 1, 1], [], []>} : vector<16x32xf32>, vector<32x64xf32>, vector<16x64xf32> -> vector<16x64xf32>
    %c0_55 = arith.constant 0 : index
    %c0_56 = arith.constant 0 : index
    %138 = vector.load %arg13[%c0_55, %c0_56] : memref<1x64xf32, #tpu.memory_space<vmem>>, vector<1x64xf32>
    %139 = vector.broadcast %138 : vector<1x64xf32> to vector<16x64xf32>
    %140 = arith.addf %137, %139 : vector<16x64xf32>
    %cst_57 = arith.constant 0.000000e+00 : f32
    %141 = vector.broadcast %cst_57 : f32 to vector<16x64xf32>
    %142 = arith.maximumf %140, %141 : vector<16x64xf32>
    %c0_58 = arith.constant 0 : index
    %c0_59 = arith.constant 0 : index
    %143 = vector.load %arg14[%c0_58, %c0_59] : memref<64x32xf32, #tpu.memory_space<vmem>>, vector<64x32xf32>
    %cst_60 = arith.constant dense<0.000000e+00> : vector<16x32xf32>
    %144 = tpu.matmul %142, %143, %cst_60 {dimension_numbers = #tpu.dot_dimension_numbers<[1], [0], [0], [1], [0, 0, 1, 1], [], []>} : vector<16x64xf32>, vector<64x32xf32>, vector<16x32xf32> -> vector<16x32xf32>
    %c0_61 = arith.constant 0 : index
    %c0_62 = arith.constant 0 : index
    %145 = vector.load %arg15[%c0_61, %c0_62] : memref<1x32xf32, #tpu.memory_space<vmem>>, vector<1x32xf32>
    %146 = vector.broadcast %145 : vector<1x32xf32> to vector<16x32xf32>
    %147 = arith.addf %144, %146 : vector<16x32xf32>
    %148 = arith.addf %147, %135 : vector<16x32xf32>
    %c0_63 = arith.constant 0 : index
    %c0_64 = arith.constant 0 : index
    %149 = vector.load %arg16[%c0_63, %c0_64] : memref<1x32xf32, #tpu.memory_space<vmem>>, vector<1x32xf32>
    %c0_65 = arith.constant 0 : index
    %c0_66 = arith.constant 0 : index
    %150 = vector.load %arg17[%c0_65, %c0_66] : memref<1x32xf32, #tpu.memory_space<vmem>>, vector<1x32xf32>
    %cst_67 = arith.constant dense<0.000000e+00> : vector<16xf32>
    %151 = vector.multi_reduction <add>, %148, %cst_67 [1] : vector<16x32xf32> to vector<16xf32>
    %152 = vector.shape_cast %151 : vector<16xf32> to vector<16x1xf32>
    %cst_68 = arith.constant 3.200000e+01 : f32
    %153 = vector.broadcast %cst_68 : f32 to vector<16x1xf32>
    %154 = arith.divf %152, %153 : vector<16x1xf32>
    %155 = vector.broadcast %154 : vector<16x1xf32> to vector<16x32xf32>
    %156 = arith.subf %148, %155 : vector<16x32xf32>
    %157 = arith.mulf %156, %156 : vector<16x32xf32>
    %cst_69 = arith.constant dense<0.000000e+00> : vector<16xf32>
    %158 = vector.multi_reduction <add>, %157, %cst_69 [1] : vector<16x32xf32> to vector<16xf32>
    %159 = vector.shape_cast %158 : vector<16xf32> to vector<16x1xf32>
    %cst_70 = arith.constant 3.200000e+01 : f32
    %160 = vector.broadcast %cst_70 : f32 to vector<16x1xf32>
    %161 = arith.divf %159, %160 : vector<16x1xf32>
    %162 = vector.broadcast %154 : vector<16x1xf32> to vector<16x32xf32>
    %163 = arith.subf %148, %162 : vector<16x32xf32>
    %cst_71 = arith.constant 9.99999974E-6 : f32
    %164 = vector.broadcast %cst_71 : f32 to vector<16x1xf32>
    %165 = arith.addf %161, %164 : vector<16x1xf32>
    %166 = math.rsqrt %165 : vector<16x1xf32>
    %167 = vector.broadcast %166 : vector<16x1xf32> to vector<16x32xf32>
    %168 = arith.mulf %163, %167 : vector<16x32xf32>
    %169 = vector.broadcast %149 : vector<1x32xf32> to vector<16x32xf32>
    %170 = arith.mulf %168, %169 : vector<16x32xf32>
    %171 = vector.broadcast %150 : vector<1x32xf32> to vector<16x32xf32>
    %172 = arith.addf %170, %171 : vector<16x32xf32>
    %c0_72 = arith.constant 0 : index
    %c0_73 = arith.constant 0 : index
    %173 = vector.load %arg18[%c0_72, %c0_73] : memref<16x32xf32, #tpu.memory_space<vmem>>, vector<16x32xf32>
    tpu.vector_store %arg18[%c0_72, %c0_73], %172 {strides = array<i32>} : memref<16x32xf32, #tpu.memory_space<vmem>>, vector<16x32xf32>,
    return
  }
  func.func @transform_0(%arg0: i32) -> (i32, i32) {
    %c0_i32 = arith.constant 0 : i32
    %c0_i32_0 = arith.constant 0 : i32
    return %arg0, %c0_i32 : i32, i32
  }
  func.func @transform_1(%arg0: i32) -> (i32, i32) {
    %c0_i32 = arith.constant 0 : i32
    %c0_i32_0 = arith.constant 0 : i32
    %c0_i32_1 = arith.constant 0 : i32
    return %c0_i32, %c0_i32_0 : i32, i32
  }
  func.func @transform_2(%arg0: i32) -> (i32, i32) {
    %c0_i32 = arith.constant 0 : i32
    %c0_i32_0 = arith.constant 0 : i32
    %c0_i32_1 = arith.constant 0 : i32
    return %c0_i32, %c0_i32_0 : i32, i32
  }
  func.func @transform_3(%arg0: i32) -> (i32, i32) {
    %c0_i32 = arith.constant 0 : i32
    %c0_i32_0 = arith.constant 0 : i32
    %c0_i32_1 = arith.constant 0 : i32
    return %c0_i32, %c0_i32_0 : i32, i32
  }
  func.func @transform_4(%arg0: i32) -> (i32, i32) {
    %c0_i32 = arith.constant 0 : i32
    %c0_i32_0 = arith.constant 0 : i32
    %c0_i32_1 = arith.constant 0 : i32
    return %c0_i32, %c0_i32_0 : i32, i32
  }
  func.func @transform_5(%arg0: i32) -> (i32, i32) {
    %c0_i32 = arith.constant 0 : i32
    %c0_i32_0 = arith.constant 0 : i32
    %c0_i32_1 = arith.constant 0 : i32
    return %c0_i32, %c0_i32_0 : i32, i32
  }
  func.func @transform_6(%arg0: i32) -> (i32, i32) {
    %c0_i32 = arith.constant 0 : i32
    %c0_i32_0 = arith.constant 0 : i32
    %c0_i32_1 = arith.constant 0 : i32
    return %c0_i32, %c0_i32_0 : i32, i32
  }
  func.func @transform_7(%arg0: i32) -> (i32, i32) {
    %c0_i32 = arith.constant 0 : i32
    %c0_i32_0 = arith.constant 0 : i32
    %c0_i32_1 = arith.constant 0 : i32
    return %c0_i32, %c0_i32_0 : i32, i32
  }
  func.func @transform_8(%arg0: i32) -> (i32, i32) {
    %c0_i32 = arith.constant 0 : i32
    %c0_i32_0 = arith.constant 0 : i32
    %c0_i32_1 = arith.constant 0 : i32
    return %c0_i32, %c0_i32_0 : i32, i32
  }
  func.func @transform_9(%arg0: i32) -> (i32, i32) {
    %c0_i32 = arith.constant 0 : i32
    %c0_i32_0 = arith.constant 0 : i32
    %c0_i32_1 = arith.constant 0 : i32
    return %c0_i32, %c0_i32_0 : i32, i32
  }
  func.func @transform_10(%arg0: i32) -> (i32, i32) {
    %c0_i32 = arith.constant 0 : i32
    %c0_i32_0 = arith.constant 0 : i32
    %c0_i32_1 = arith.constant 0 : i32
    return %c0_i32, %c0_i32_0 : i32, i32
  }
  func.func @transform_11(%arg0: i32) -> (i32, i32) {
    %c0_i32 = arith.constant 0 : i32
    %c0_i32_0 = arith.constant 0 : i32
    %c0_i32_1 = arith.constant 0 : i32
    return %c0_i32, %c0_i32_0 : i32, i32
  }
  func.func @transform_12(%arg0: i32) -> (i32, i32) {
    %c0_i32 = arith.constant 0 : i32
    %c0_i32_0 = arith.constant 0 : i32
    %c0_i32_1 = arith.constant 0 : i32
    return %c0_i32, %c0_i32_0 : i32, i32
  }
  func.func @transform_13(%arg0: i32) -> (i32, i32) {
    %c0_i32 = arith.constant 0 : i32
    %c0_i32_0 = arith.constant 0 : i32
    %c0_i32_1 = arith.constant 0 : i32
    return %c0_i32, %c0_i32_0 : i32, i32
  }
  func.func @transform_14(%arg0: i32) -> (i32, i32) {
    %c0_i32 = arith.constant 0 : i32
    %c0_i32_0 = arith.constant 0 : i32
    %c0_i32_1 = arith.constant 0 : i32
    return %c0_i32, %c0_i32_0 : i32, i32
  }
  func.func @transform_15(%arg0: i32) -> (i32, i32) {
    %c0_i32 = arith.constant 0 : i32
    %c0_i32_0 = arith.constant 0 : i32
    %c0_i32_1 = arith.constant 0 : i32
    return %c0_i32, %c0_i32_0 : i32, i32
  }
  func.func @transform_16(%arg0: i32) -> (i32, i32) {
    %c0_i32 = arith.constant 0 : i32
    %c0_i32_0 = arith.constant 0 : i32
    %c0_i32_1 = arith.constant 0 : i32
    return %c0_i32, %c0_i32_0 : i32, i32
  }
  func.func @transform_17(%arg0: i32) -> (i32, i32) {
    %c0_i32 = arith.constant 0 : i32
    %c0_i32_0 = arith.constant 0 : i32
    return %arg0, %c0_i32 : i32, i32
  }
  func.func @transform_18(%arg0: i32) -> (i32, i32, i32) {
    %c0_i32 = arith.constant 0 : i32
    %c0_i32_0 = arith.constant 0 : i32
    %c0_i32_1 = arith.constant 0 : i32
    return %arg0, %c0_i32, %c0_i32_0 : i32, i32, i32
  }
}

</mosaic_0001>

<bundles_post_ra>
// kernel: tpu_custom_call.1
= control target key start
LH: loop header
LB: loop body
LE: loop exit
PB: predicated region body
PF: predicated region fallthrough
CT: control target
= control target key end

     0   :  { %s4028_s0 = inlined_call_operand.hbm [shape: f32[16,32], index: 0, kind: input, shape index: {}]   ;;  %s4029_s1 = inlined_call_operand.hbm [shape: f32[32,32], index: 1, kind: input, shape index: {}]   ;;  %s4030_s2 = inlined_call_operand.hbm [shape: f32[1,32], index: 2, kind: input, shape index: {}]   ;;  %s4031_s3 = inlined_call_operand.hbm [shape: f32[32,32], index: 3, kind: input, shape index: {}]   ;;  %s4032_s4 = inlined_call_operand.hbm [shape: f32[1,32], index: 4, kind: input, shape index: {}]   ;;  %s4033_s5 = inlined_call_operand.hbm [shape: f32[32,32], index: 5, kind: input, shape index: {}]   ;;  %s4034_s6 = inlined_call_operand.hbm [shape: f32[1,32], index: 6, kind: input, shape index: {}]   ;;  %s4035_s7 = inlined_call_operand.hbm [shape: f32[32,32], index: 7, kind: input, shape index: {}]   ;;  %s4036_s8 = inlined_call_operand.hbm [shape: f32[1,32], index: 8, kind: input, shape index: {}]   ;;  %s4037_s9 = inlined_call_operand.hbm [shape: f32[1,32], index: 9, kind: input, shape index: {}]   ;;  %s4038_s10 = inlined_call_operand.hbm [shape: f32[1,32], index: 10, kind: input, shape index: {}]   ;;  %s4039_s11 = inlined_call_operand.hbm [shape: f32[32,64], index: 11, kind: input, shape index: {}]   ;;  %s4040_s12 = inlined_call_operand.hbm [shape: f32[1,64], index: 12, kind: input, shape index: {}]   ;;  %s4041_s13 = inlined_call_operand.hbm [shape: f32[64,32], index: 13, kind: input, shape index: {}]   ;;  %s4042_s14 = inlined_call_operand.hbm [shape: f32[1,32], index: 14, kind: input, shape index: {}]   ;;  %s4043_s15 = inlined_call_operand.hbm [shape: f32[1,32], index: 15, kind: input, shape index: {}]   ;;  %s4044_s16 = inlined_call_operand.hbm [shape: f32[1,32], index: 16, kind: input, shape index: {}]   ;;  %s4045_s17 = inlined_call_operand.hbm [shape: f32[16,32], index: 17, kind: output, shape index: {0}]   ;;  %s4046_s18 = inlined_call_operand.hbm [shape: f32[2,8,32], index: 18, kind: output, shape index: {1}]  }
   0x1   :  { %4051 = sst [smem:[#allocation43_spill]] %s4028_s0 }
   0x2   :  { %4052 = sst [smem:[#allocation44_spill]] %s4029_s1 }
   0x3   :  { %4053 = sst [smem:[#allocation45_spill]] %s4030_s2 }
   0x4   :  { %4054 = sst [smem:[#allocation46_spill]] %s4045_s17 }
   0x5   :  { %24 = vsyncpa [#allocation3], 0 }
   0x6   :  { %25 = vsyncpa [#allocation6], 0 }
   0x7   :  { %26 = vsyncpa [#allocation9], 0 }
   0x8   :  { %27 = vsyncpa [#allocation12], 0 }
   0x9   :  { %28 = vsyncpa [#allocation15], 0 }
   0xa   :  { %29 = vsyncpa [#allocation18], 0 }
   0xb   :  { %30 = vsyncpa [#allocation21], 0 }
   0xc   :  { %31 = vsyncpa [#allocation24], 0 }
   0xd   :  { %32 = vsyncpa [#allocation27], 0 }
   0xe   :  { %33 = vsyncpa [#allocation4], 0 }
   0xf   :  { %34 = vsyncpa [#allocation31], 0  ;;  %s3403_s27 = smov [#allocation5]   ;;  %s3404_s29 = smov [#allocation8]  }
  0x10   :  { %s52_s28 = sshll.u32 %s3403_s27, 4  ;;  %s74_s30 = sshll.u32 %s3404_s29, 4  ;;  %s53_s28 = int_to_ptr.vmem [resolvable:$true] %s52_s28  ;;  %s3526_s30 = int_to_ptr.vmem [resolvable:$true] %s74_s30 }
  0x11   :  { %s4055_s1 = sld [smem:[#allocation44_spill]] }
  0x17   :  { %s2963_s20 = scalar_lea.hbm %s4055_s1, 512 }
  0x18   :  { %p2964_p0 = scmp.ne.s32.totalorder %s4055_s1, %s2963_s20  ;;  %p2967_p1 = scmp.lt.u32.totalorder %s2963_s20, %s4055_s1 }
  0x1a   :  { %p2969_p2 = pnand %p2967_p1, %p2964_p0 }
  0x1c   :  { %2972 = shalt.err (!%p2969_p2)
}
  0x1d   :  { %s2973_s24 = scalar_lea.vmem %s53_s28, 512  ;;  %p2978_p4 = scmp.lt.s32.totalorder %s53_s28, %s53_s28 }
  0x1e   :  { %p2974_p3 = scmp.ne.s32.totalorder %s53_s28, %s2973_s24  ;;  %p2979_p5 = scmp.lt.s32.totalorder %s2973_s24, %s2973_s24 }
  0x20   :  { %p2980_p6 = por %p2979_p5, %p2978_p4 }
  0x22   :  { %p2981_p7 = pnand %p2980_p6, %p2974_p3 }
  0x24   :  { %2984 = shalt.err (!%p2981_p7)
}
  0x25   :  { %s3405_s25 = smov 128   ;;  %s3406_s26 = smov 8  }
  0x26   :  { %58 = dma.hbm_to_vmem [thread:$0]  %s4055_s1, 512, %s53_s28, [#allocation6], %s3405_s25, %s3405_s25, %s3406_s26  }
  0x27   :  { %s2985_s20 = scalar_lea.hbm %s4031_s3, 512 }
  0x28   :  { %p2986_p8 = scmp.ne.s32.totalorder %s4031_s3, %s2985_s20  ;;  %p2989_p9 = scmp.lt.u32.totalorder %s2985_s20, %s4031_s3 }
  0x2a   :  { %p2991_p10 = pnand %p2989_p9, %p2986_p8 }
  0x2c   :  { %2994 = shalt.err (!%p2991_p10)
}
  0x2d   :  { %s2995_s24 = scalar_lea.vmem %s3526_s30, 512  ;;  %p3000_p12 = scmp.lt.s32.totalorder %s3526_s30, %s3526_s30 }
  0x2e   :  { %p2996_p11 = scmp.ne.s32.totalorder %s3526_s30, %s2995_s24  ;;  %p3001_p13 = scmp.lt.s32.totalorder %s2995_s24, %s2995_s24 }
  0x30   :  { %p3002_p0 = por %p3001_p13, %p3000_p12 }
  0x32   :  { %p3003_p1 = pnand %p3002_p0, %p2996_p11 }
  0x34   :  { %3006 = shalt.err (!%p3003_p1)
}
  0x35   :  { %80 = dma.hbm_to_vmem [thread:$0]  %s4031_s3, 512, %s3526_s30, [#allocation9], %s3405_s25, %s3405_s25, %s3406_s26  }
  0x36   :  { %s3407_s27 = smov [#allocation11]   ;;  %s3408_s0 = smov [#allocation14]  }
  0x37   :  { %s96_s29 = sshll.u32 %s3407_s27, 4  ;;  %s118_s19 = sshll.u32 %s3408_s0, 4  ;;  %s97_s29 = int_to_ptr.vmem [resolvable:$true] %s96_s29  ;;  %s3563_s19 = int_to_ptr.vmem [resolvable:$true] %s118_s19 }
  0x38   :  { %s3007_s22 = scalar_lea.hbm %s4033_s5, 512 }
  0x39   :  { %p3008_p2 = scmp.ne.s32.totalorder %s4033_s5, %s3007_s22  ;;  %p3011_p3 = scmp.lt.u32.totalorder %s3007_s22, %s4033_s5 }
  0x3b   :  { %p3013_p4 = pnand %p3011_p3, %p3008_p2 }
  0x3d   :  { %3016 = shalt.err (!%p3013_p4)
}
  0x3e   :  { %s3017_s3 = scalar_lea.vmem %s97_s29, 512  ;;  %p3022_p6 = scmp.lt.s32.totalorder %s97_s29, %s97_s29 }
  0x3f   :  { %p3018_p5 = scmp.ne.s32.totalorder %s97_s29, %s3017_s3  ;;  %p3023_p7 = scmp.lt.s32.totalorder %s3017_s3, %s3017_s3 }
  0x41   :  { %p3024_p8 = por %p3023_p7, %p3022_p6 }
  0x43   :  { %p3025_p9 = pnand %p3024_p8, %p3018_p5 }
  0x45   :  { %3028 = shalt.err (!%p3025_p9)
}
  0x46   :  { %102 = dma.hbm_to_vmem [thread:$0]  %s4033_s5, 512, %s97_s29, [#allocation12], %s3405_s25, %s3405_s25, %s3406_s26  }
  0x47   :  { %s3029_s17 = scalar_lea.hbm %s4035_s7, 512 }
  0x48   :  { %p3030_p10 = scmp.ne.s32.totalorder %s4035_s7, %s3029_s17  ;;  %p3033_p11 = scmp.lt.u32.totalorder %s3029_s17, %s4035_s7 }
  0x4a   :  { %p3035_p12 = pnand %p3033_p11, %p3030_p10 }
  0x4c   :  { %3038 = shalt.err (!%p3035_p12)
}
  0x4d   :  { %s3039_s2 = scalar_lea.vmem %s3563_s19, 512  ;;  %p3044_p0 = scmp.lt.s32.totalorder %s3563_s19, %s3563_s19 }
  0x4e   :  { %p3040_p13 = scmp.ne.s32.totalorder %s3563_s19, %s3039_s2  ;;  %p3045_p1 = scmp.lt.s32.totalorder %s3039_s2, %s3039_s2 }
  0x50   :  { %p3046_p2 = por %p3045_p1, %p3044_p0 }
  0x52   :  { %p3047_p3 = pnand %p3046_p2, %p3040_p13 }
  0x54   :  { %3050 = shalt.err (!%p3047_p3)
}
  0x55   :  { %124 = dma.hbm_to_vmem [thread:$0]  %s4035_s7, 512, %s3563_s19, [#allocation15], %s3405_s25, %s3405_s25, %s3406_s26  }
  0x56   :  { %s3409_s23 = smov [#allocation17]   ;;  %s3410_s3 = smov [#allocation20]  }
  0x57   :  { %s141_s24 = sshll.u32 %s3409_s23, 4  ;;  %s160_s30 = sshll.u32 %s3410_s3, 4  ;;  %s142_s24 = int_to_ptr.vmem [resolvable:$true] %s141_s24  ;;  %s3600_s30 = int_to_ptr.vmem [resolvable:$true] %s160_s30 }
  0x58   :  { %s3051_s27 = scalar_lea.hbm %s4037_s9, 16 }
  0x59   :  { %p3052_p4 = scmp.ne.s32.totalorder %s4037_s9, %s3051_s27  ;;  %p3055_p5 = scmp.lt.u32.totalorder %s3051_s27, %s4037_s9 }
  0x5b   :  { %p3057_p6 = pnand %p3055_p5, %p3052_p4 }
  0x5d   :  { %3060 = shalt.err (!%p3057_p6)
}
  0x5e   :  { %s3061_s7 = scalar_lea.vmem %s142_s24, 16  ;;  %s3065_s19 = scalar_lea.vmem %s142_s24, 32 }
  0x5f   :  { %p3062_p7 = scmp.ne.s32.totalorder %s142_s24, %s3061_s7  ;;  %p3066_p8 = scmp.lt.s32.totalorder %s142_s24, %s142_s24 }
  0x60   :  { %p3067_p9 = scmp.lt.s32.totalorder %s3065_s19, %s3061_s7 }
  0x62   :  { %p3068_p10 = por %p3067_p9, %p3066_p8 }
  0x64   :  { %p3069_p11 = pnand %p3068_p10, %p3062_p7 }
  0x66   :  { %3072 = shalt.err (!%p3069_p11)
}
  0x67   :  { %144 = dma.hbm_to_vmem [thread:$0]  %s4037_s9, 16, %s142_s24, [#allocation18]  }
  0x68   :  { %s3073_s23 = scalar_lea.hbm %s4039_s11, 512 }
  0x69   :  { %p3074_p12 = scmp.ne.s32.totalorder %s4039_s11, %s3073_s23  ;;  %p3077_p13 = scmp.lt.u32.totalorder %s3073_s23, %s4039_s11 }
  0x6b   :  { %p3079_p0 = pnand %p3077_p13, %p3074_p12 }
  0x6d   :  { %3082 = shalt.err (!%p3079_p0)
}
  0x6e   :  { %s3083_s17 = scalar_lea.vmem %s3600_s30, 512  ;;  %p3088_p2 = scmp.lt.s32.totalorder %s3600_s30, %s3600_s30 }
  0x6f   :  { %p3084_p1 = scmp.ne.s32.totalorder %s3600_s30, %s3083_s17  ;;  %p3089_p3 = scmp.lt.s32.totalorder %s3083_s17, %s3083_s17 }
  0x71   :  { %p3090_p4 = por %p3089_p3, %p3088_p2 }
  0x73   :  { %p3091_p5 = pnand %p3090_p4, %p3084_p1 }
  0x75   :  { %3094 = shalt.err (!%p3091_p5)
}
  0x76   :  { %166 = dma.hbm_to_vmem [thread:$0]  %s4039_s11, 512, %s3600_s30, [#allocation21], %s3405_s25, %s3405_s25, %s3406_s26  }
  0x77   :  { %s3411_s0 = smov [#allocation23]   ;;  %s3412_s21 = smov [#allocation26]  }
  0x78   :  { %s182_s20 = sshll.u32 %s3411_s0, 4  ;;  %s205_s7 = sshll.u32 %s3412_s21, 4  ;;  %s183_s20 = int_to_ptr.vmem [resolvable:$true] %s182_s20  ;;  %s206_s7 = int_to_ptr.vmem [resolvable:$true] %s205_s7 }
  0x79   :  { %s3095_s2 = scalar_lea.hbm %s4041_s13, 1024 }
  0x7a   :  { %p3096_p6 = scmp.ne.s32.totalorder %s4041_s13, %s3095_s2  ;;  %p3099_p7 = scmp.lt.u32.totalorder %s3095_s2, %s4041_s13 }
  0x7c   :  { %p3101_p8 = pnand %p3099_p7, %p3096_p6 }
  0x7e   :  { %3104 = shalt.err (!%p3101_p8)
}
  0x7f   :  { %s3105_s11 = scalar_lea.vmem %s183_s20, 1024  ;;  %p3110_p10 = scmp.lt.s32.totalorder %s183_s20, %s183_s20 }
  0x80   :  { %p3106_p9 = scmp.ne.s32.totalorder %s183_s20, %s3105_s11  ;;  %p3111_p11 = scmp.lt.s32.totalorder %s3105_s11, %s3105_s11 }
  0x82   :  { %p3112_p12 = por %p3111_p11, %p3110_p10 }
  0x84   :  { %p3113_p13 = pnand %p3112_p12, %p3106_p9 }
  0x86   :  { %3116 = shalt.err (!%p3113_p13)
}
  0x87   :  { %188 = dma.hbm_to_vmem [thread:$0]  %s4041_s13, 1024, %s183_s20, [#allocation24], %s3405_s25, %s3405_s25, %s3406_s26  }
  0x88   :  { %s3117_s17 = scalar_lea.hbm %s4043_s15, 16 }
  0x89   :  { %p3118_p0 = scmp.ne.s32.totalorder %s4043_s15, %s3117_s17  ;;  %p3121_p1 = scmp.lt.u32.totalorder %s3117_s17, %s4043_s15 }
  0x8b   :  { %p3123_p2 = pnand %p3121_p1, %p3118_p0 }
  0x8d   :  { %3126 = shalt.err (!%p3123_p2)
}
  0x8e   :  { %s3127_s19 = scalar_lea.vmem %s206_s7, 16  ;;  %s3131_s22 = scalar_lea.vmem %s206_s7, 32 }
  0x8f   :  { %p3128_p3 = scmp.ne.s32.totalorder %s206_s7, %s3127_s19  ;;  %p3132_p4 = scmp.lt.s32.totalorder %s206_s7, %s206_s7 }
  0x90   :  { %p3133_p5 = scmp.lt.s32.totalorder %s3131_s22, %s3127_s19 }
  0x92   :  { %p3134_p6 = por %p3133_p5, %p3132_p4 }
  0x94   :  { %p3135_p7 = pnand %p3134_p6, %p3128_p3 }
  0x96   :  { %3138 = shalt.err (!%p3135_p7)
}
  0x97   :  { %208 = dma.hbm_to_vmem [thread:$0]  %s4043_s15, 16, %s206_s7, [#allocation27]  }
  0x98   :  { %s3413_s2 = smov [#allocation2]   ;;  %s3414_s29 = smov [#allocation7]  }
  0x99   :  { %s40_s5 = sshll.u32 %s3413_s2, 4  ;;  %s65_s23 = sshll.u32 %s3414_s29, 4  ;;  %s41_s5 = int_to_ptr.vmem [resolvable:$true] %s40_s5  ;;  %s66_s23 = int_to_ptr.vmem [resolvable:$true] %s65_s23 }
  0x9a   :  { %s4056_s30 = sld [smem:[#allocation43_spill]] }
  0xa0   :  { %s3139_s28 = scalar_lea.hbm %s4056_s30, 256 }
  0xa1   :  { %p3140_p8 = scmp.ne.s32.totalorder %s4056_s30, %s3139_s28  ;;  %p3143_p9 = scmp.lt.u32.totalorder %s3139_s28, %s4056_s30 }
  0xa3   :  { %p3145_p10 = pnand %p3143_p9, %p3140_p8 }
  0xa5   :  { %3148 = shalt.err (!%p3145_p10)
}
  0xa6   :  { %s3149_s15 = scalar_lea.vmem %s41_s5, 256  ;;  %p3154_p12 = scmp.lt.s32.totalorder %s41_s5, %s41_s5 }
  0xa7   :  { %p3150_p11 = scmp.ne.s32.totalorder %s41_s5, %s3149_s15  ;;  %p3155_p13 = scmp.lt.s32.totalorder %s3149_s15, %s3149_s15 }
  0xa9   :  { %p3156_p0 = por %p3155_p13, %p3154_p12 }
  0xab   :  { %p3157_p1 = pnand %p3156_p0, %p3150_p11 }
  0xad   :  { %3160 = shalt.err (!%p3157_p1)
}
  0xae   :  { %46 = dma.hbm_to_vmem [thread:$0]  %s4056_s30, 256, %s41_s5, [#allocation3], %s3405_s25, %s3405_s25, %s3406_s26  }
  0xaf   :  { %s4057_s19 = sld [smem:[#allocation45_spill]] }
  0xb5   :  { %s3161_s22 = scalar_lea.hbm %s4057_s19, 16 }
  0xb6   :  { %p3162_p2 = scmp.ne.s32.totalorder %s4057_s19, %s3161_s22  ;;  %p3165_p3 = scmp.lt.u32.totalorder %s3161_s22, %s4057_s19 }
  0xb8   :  { %p3167_p4 = pnand %p3165_p3, %p3162_p2 }
  0xba   :  { %3170 = shalt.err (!%p3167_p4)
}
  0xbb   :  { %s3171_s3 = scalar_lea.vmem %s66_s23, 16  ;;  %s3175_s11 = scalar_lea.vmem %s66_s23, 32 }
  0xbc   :  { %p3172_p5 = scmp.ne.s32.totalorder %s66_s23, %s3171_s3  ;;  %p3176_p6 = scmp.lt.s32.totalorder %s66_s23, %s66_s23 }
  0xbd   :  { %p3177_p7 = scmp.lt.s32.totalorder %s3175_s11, %s3171_s3 }
  0xbf   :  { %p3178_p8 = por %p3177_p7, %p3176_p6 }
  0xc1   :  { %p3179_p9 = pnand %p3178_p8, %p3172_p5 }
  0xc3   :  { %3182 = shalt.err (!%p3179_p9)
}
  0xc4   :  { %68 = dma.hbm_to_vmem [thread:$0]  %s4057_s19, 16, %s66_s23, [#allocation6]  }
  0xc5   :  { %s3415_s28 = smov [#allocation10]   ;;  %s3416_s27 = smov [#allocation13]  }
  0xc6   :  { %s87_s1 = sshll.u32 %s3415_s28, 4  ;;  %s109_s17 = sshll.u32 %s3416_s27, 4  ;;  %s88_s1 = int_to_ptr.vmem [resolvable:$true] %s87_s1  ;;  %s110_s17 = int_to_ptr.vmem [resolvable:$true] %s109_s17 }
  0xc7   :  { %s3183_s7 = scalar_lea.hbm %s4032_s4, 16 }
  0xc8   :  { %p3184_p10 = scmp.ne.s32.totalorder %s4032_s4, %s3183_s7  ;;  %p3187_p11 = scmp.lt.u32.totalorder %s3183_s7, %s4032_s4 }
  0xca   :  { %p3189_p12 = pnand %p3187_p11, %p3184_p10 }
  0xcc   :  { %3192 = shalt.err (!%p3189_p12)
}
  0xcd   :  { %s3193_s23 = scalar_lea.vmem %s88_s1, 16  ;;  %s3197_s19 = scalar_lea.vmem %s88_s1, 32 }
  0xce   :  { %p3194_p13 = scmp.ne.s32.totalorder %s88_s1, %s3193_s23  ;;  %p3198_p0 = scmp.lt.s32.totalorder %s88_s1, %s88_s1 }
  0xcf   :  { %p3199_p1 = scmp.lt.s32.totalorder %s3197_s19, %s3193_s23 }
  0xd1   :  { %p3200_p2 = por %p3199_p1, %p3198_p0 }
  0xd3   :  { %p3201_p3 = pnand %p3200_p2, %p3194_p13 }
  0xd5   :  { %3204 = shalt.err (!%p3201_p3)
}
  0xd6   :  { %90 = dma.hbm_to_vmem [thread:$0]  %s4032_s4, 16, %s88_s1, [#allocation9]  }
  0xd7   :  { %s3205_s3 = scalar_lea.hbm %s4034_s6, 16 }
  0xd8   :  { %p3206_p4 = scmp.ne.s32.totalorder %s4034_s6, %s3205_s3  ;;  %p3209_p5 = scmp.lt.u32.totalorder %s3205_s3, %s4034_s6 }
  0xda   :  { %p3211_p6 = pnand %p3209_p5, %p3206_p4 }
  0xdc   :  { %3214 = shalt.err (!%p3211_p6)
}
  0xdd   :  { %s3215_s27 = scalar_lea.vmem %s110_s17, 16  ;;  %s3219_s9 = scalar_lea.vmem %s110_s17, 32 }
  0xde   :  { %p3216_p7 = scmp.ne.s32.totalorder %s110_s17, %s3215_s27  ;;  %p3220_p8 = scmp.lt.s32.totalorder %s110_s17, %s110_s17 }
  0xdf   :  { %p3221_p9 = scmp.lt.s32.totalorder %s3219_s9, %s3215_s27 }
  0xe1   :  { %p3222_p10 = por %p3221_p9, %p3220_p8 }
  0xe3   :  { %p3223_p11 = pnand %p3222_p10, %p3216_p7 }
  0xe5   :  { %3226 = shalt.err (!%p3223_p11)
}
  0xe6   :  { %112 = dma.hbm_to_vmem [thread:$0]  %s4034_s6, 16, %s110_s17, [#allocation12]  }
  0xe7   :  { %s3417_s15 = smov [#allocation16]   ;;  %s3418_s24 = smov [#allocation19]  }
  0xe8   :  { %s131_s7 = sshll.u32 %s3417_s15, 4  ;;  %s151_s0 = sshll.u32 %s3418_s24, 4  ;;  %s132_s7 = int_to_ptr.vmem [resolvable:$true] %s131_s7  ;;  %s152_s0 = int_to_ptr.vmem [resolvable:$true] %s151_s0 }
  0xe9   :  { %s3227_s23 = scalar_lea.hbm %s4036_s8, 16 }
  0xea   :  { %p3228_p12 = scmp.ne.s32.totalorder %s4036_s8, %s3227_s23  ;;  %p3231_p13 = scmp.lt.u32.totalorder %s3227_s23, %s4036_s8 }
  0xec   :  { %p3233_p0 = pnand %p3231_p13, %p3228_p12 }
  0xee   :  { %3236 = shalt.err (!%p3233_p0)
}
  0xef   :  { %s3237_s6 = scalar_lea.vmem %s132_s7, 16  ;;  %s3241_s17 = scalar_lea.vmem %s132_s7, 32 }
  0xf0   :  { %p3238_p1 = scmp.ne.s32.totalorder %s132_s7, %s3237_s6  ;;  %p3242_p2 = scmp.lt.s32.totalorder %s132_s7, %s132_s7 }
  0xf1   :  { %p3243_p3 = scmp.lt.s32.totalorder %s3241_s17, %s3237_s6 }
  0xf3   :  { %p3244_p4 = por %p3243_p3, %p3242_p2 }
  0xf5   :  { %p3245_p5 = pnand %p3244_p4, %p3238_p1 }
  0xf7   :  { %3248 = shalt.err (!%p3245_p5)
}
  0xf8   :  { %134 = dma.hbm_to_vmem [thread:$0]  %s4036_s8, 16, %s132_s7, [#allocation15]  }
  0xf9   :  { %s3249_s30 = scalar_lea.hbm %s4038_s10, 16 }
  0xfa   :  { %p3250_p6 = scmp.ne.s32.totalorder %s4038_s10, %s3249_s30  ;;  %p3253_p7 = scmp.lt.u32.totalorder %s3249_s30, %s4038_s10 }
  0xfc   :  { %p3255_p8 = pnand %p3253_p7, %p3250_p6 }
  0xfe   :  { %3258 = shalt.err (!%p3255_p8)
}
  0xff   :  { %s3259_s1 = scalar_lea.vmem %s152_s0, 16  ;;  %s3263_s15 = scalar_lea.vmem %s152_s0, 32 }
 0x100   :  { %p3260_p9 = scmp.ne.s32.totalorder %s152_s0, %s3259_s1  ;;  %p3264_p10 = scmp.lt.s32.totalorder %s152_s0, %s152_s0 }
 0x101   :  { %p3265_p11 = scmp.lt.s32.totalorder %s3263_s15, %s3259_s1 }
 0x103   :  { %p3266_p12 = por %p3265_p11, %p3264_p10 }
 0x105   :  { %p3267_p13 = pnand %p3266_p12, %p3260_p9 }
 0x107   :  { %3270 = shalt.err (!%p3267_p13)
}
 0x108   :  { %154 = dma.hbm_to_vmem [thread:$0]  %s4038_s10, 16, %s152_s0, [#allocation18]  }
 0x109   :  { %s3419_s24 = smov [#allocation22]   ;;  %s3420_s22 = smov [#allocation25]  }
 0x10a   :  { %s173_s21 = sshll.u32 %s3419_s24, 4  ;;  %s195_s23 = sshll.u32 %s3420_s22, 4  ;;  %s174_s21 = int_to_ptr.vmem [resolvable:$true] %s173_s21  ;;  %s196_s23 = int_to_ptr.vmem [resolvable:$true] %s195_s23 }
 0x10b   :  { %s3271_s20 = scalar_lea.hbm %s4040_s12, 16 }
 0x10c   :  { %p3272_p0 = scmp.ne.s32.totalorder %s4040_s12, %s3271_s20  ;;  %p3275_p1 = scmp.lt.u32.totalorder %s3271_s20, %s4040_s12 }
 0x10e   :  { %p3277_p2 = pnand %p3275_p1, %p3272_p0 }
 0x110   :  { %3280 = shalt.err (!%p3277_p2)
}
 0x111   :  { %s3281_s10 = scalar_lea.vmem %s174_s21, 16  ;;  %s3285_s0 = scalar_lea.vmem %s174_s21, 32 }
 0x112   :  { %p3282_p3 = scmp.ne.s32.totalorder %s174_s21, %s3281_s10  ;;  %p3286_p4 = scmp.lt.s32.totalorder %s174_s21, %s174_s21 }
 0x113   :  { %p3287_p5 = scmp.lt.s32.totalorder %s3285_s0, %s3281_s10 }
 0x115   :  { %p3288_p6 = por %p3287_p5, %p3286_p4 }
 0x117   :  { %p3289_p7 = pnand %p3288_p6, %p3282_p3 }
 0x119   :  { %3292 = shalt.err (!%p3289_p7)
}
 0x11a   :  { %176 = dma.hbm_to_vmem [thread:$0]  %s4040_s12, 16, %s174_s21, [#allocation21]  }
 0x11b   :  { %s3293_s28 = scalar_lea.hbm %s4042_s14, 16 }
 0x11c   :  { %p3294_p8 = scmp.ne.s32.totalorder %s4042_s14, %s3293_s28  ;;  %p3297_p9 = scmp.lt.u32.totalorder %s3293_s28, %s4042_s14 }
 0x11e   :  { %p3299_p10 = pnand %p3297_p9, %p3294_p8 }
 0x120   :  { %3302 = shalt.err (!%p3299_p10)
}
 0x121   :  { %s3303_s15 = scalar_lea.vmem %s196_s23, 16  ;;  %s3307_s8 = scalar_lea.vmem %s196_s23, 32 }
 0x122   :  { %p3304_p11 = scmp.ne.s32.totalorder %s196_s23, %s3303_s15  ;;  %p3308_p12 = scmp.lt.s32.totalorder %s196_s23, %s196_s23 }
 0x123   :  { %p3309_p13 = scmp.lt.s32.totalorder %s3307_s8, %s3303_s15 }
 0x125   :  { %p3310_p0 = por %p3309_p13, %p3308_p12 }
 0x127   :  { %p3311_p1 = pnand %p3310_p0, %p3304_p11 }
 0x129   :  { %3314 = shalt.err (!%p3311_p1)
}
 0x12a   :  { %198 = dma.hbm_to_vmem [thread:$0]  %s4042_s14, 16, %s196_s23, [#allocation24]  }
 0x12b   :  { %s3421_s24 = smov [#allocation28]   ;;  %s3315_s13 = scalar_lea.hbm %s4044_s16, 16 }
 0x12c   :  { %s215_s21 = sshll.u32 %s3421_s24, 4  ;;  %p3316_p2 = scmp.ne.s32.totalorder %s4044_s16, %s3315_s13  ;;  %s216_s21 = int_to_ptr.vmem [resolvable:$true] %s215_s21 }
 0x12d   :  { %p3319_p3 = scmp.lt.u32.totalorder %s3315_s13, %s4044_s16 }
 0x12f   :  { %p3321_p4 = pnand %p3319_p3, %p3316_p2 }
 0x131   :  { %3324 = shalt.err (!%p3321_p4)
}
 0x132   :  { %s3325_s29 = scalar_lea.vmem %s216_s21, 16  ;;  %s3329_s14 = scalar_lea.vmem %s216_s21, 32 }
 0x133   :  { %p3326_p5 = scmp.ne.s32.totalorder %s216_s21, %s3325_s29  ;;  %p3330_p6 = scmp.lt.s32.totalorder %s216_s21, %s216_s21 }
 0x134   :  { %p3331_p7 = scmp.lt.s32.totalorder %s3329_s14, %s3325_s29 }
 0x136   :  { %p3332_p8 = por %p3331_p7, %p3330_p6 }
 0x138   :  { %p3333_p9 = pnand %p3332_p8, %p3326_p5 }
 0x13a   :  { %3336 = shalt.err (!%p3333_p9)
}
 0x13b   :  { %218 = dma.hbm_to_vmem [thread:$0]  %s4044_s16, 16, %s216_s21, [#allocation27]  }
 0x13c   :  { %3381 = dma.done.wait [#allocation3], 256  }
 0x13d   :  { %3382 = vsyncadd [#allocation3], 4294967040 }
 0x13e   :  { %3383 = dma.done.wait [#allocation6], 528  }
 0x13f   :  { %3384 = vsyncadd [#allocation6], 4294966768 }
 0x140   :  { %3385 = dma.done.wait [#allocation9], 528  }
 0x141   :  { %3386 = vsyncadd [#allocation9], 4294966768 }
 0x142   :  { %3387 = dma.done.wait [#allocation12], 528  }
 0x143   :  { %3388 = vsyncadd [#allocation12], 4294966768 }
 0x144   :  { %3389 = dma.done.wait [#allocation15], 528  }
 0x145   :  { %3390 = vsyncadd [#allocation15], 4294966768 }
 0x146   :  { %3391 = dma.done.wait [#allocation18], 32  }
 0x147   :  { %3392 = vsyncadd [#allocation18], 4294967264 }
 0x148   :  { %3393 = dma.done.wait [#allocation21], 528  }
 0x149   :  { %3394 = vsyncadd [#allocation21], 4294966768 }
 0x14a   :  { %3395 = dma.done.wait [#allocation24], 1040  }
 0x14b   :  { %3396 = vsyncadd [#allocation24], 4294966256 }
 0x14c   :  { %3397 = dma.done.wait [#allocation27], 32  }
 0x14d   :  { %3398 = vsyncadd [#allocation27], 4294967264  ;;  %vm283_vm0 = vcmask 261120   ;;  %v272_v0 = vld [vmem:[#allocation5] sm:$0xff]  ;;  %v273_v1 = vld [vmem:[#allocation5 + $0x8] sm:$0xff]  ;;  %v3422_v14 = vmov 0.0  }
 0x14e   :  { %v274_v2 = vld [vmem:[#allocation5 + $0x10] sm:$0xff]  ;;  %v2841_v3 = vpack.c.bf16 %v273_v1, %v272_v0  ;;  %v275_v4 = vld [vmem:[#allocation5 + $0x18] sm:$0xff]  ;;  %v367_v7 = vld [vmem:[#allocation8] sm:$0xff]  ;;  %vm3423_vm1 = vmmov 0   ;;  %vm543_vm2 = vcmask 64512   ;;  %s3424_s16 = smov 120  }
 0x14f   :  { %v3772_v5 = vld [vmem:[#allocation2] sm:$0xff]  ;;  %v2845_v6 = vpack.c.bf16 %v275_v4, %v274_v2  ;;  %v370_v11 = vld [vmem:[#allocation8 + $0x18] sm:$0xff]  ;;  %v2551_v18 = vld [vmem:[#allocation10] ss:$0 sm:$0xff]  ;;  %s3425_s0 = smov 112   ;;  %s3426_s3 = smov 104  }
 0x150   :  { %2686 = vmatprep.mubr.msk.f32.mxu1 %vm283_vm0, %v3772_v5  ;;  %v368_v8 = vld [vmem:[#allocation8 + $0x8] sm:$0xff]  ;;  %2708 = vmatprep.mubr.msk.f32.mxu0 %vm283_vm0, %v3772_v5  ;;  %v369_v10 = vld [vmem:[#allocation8 + $0x10] sm:$0xff]  ;;  %v2548_v17 = vld [vmem:[#allocation7] ss:$0 sm:$0xff]  ;;  %vm2377_vm3 = vcmask 523264   ;;  %s3427_s11 = smov 16  }
 0x151   :  { %2842 = vmatprep.subr.bf16.mxu1 %v2841_v3  ;;  %v2849_v9 = vpack.c.bf16 %v368_v8, %v367_v7  ;;  %v3778_v12 = vld [vmem:[#allocation2 + $0x8] sm:$0xff]  ;;  %v2853_v13 = vpack.c.bf16 %v370_v11, %v369_v10  ;;  %v453_v27 = vld [vmem:[#allocation11] sm:$0xff]  ;;  %v454_v28 = vld [vmem:[#allocation11 + $0x8] sm:$0xff]  ;;  %s3428_s5 = smov 24   ;;  %vm2204_vm4 = vcmask 130048   ;;  %vm2207_vm5 = vcmask 195584  }
 0x152   :  { %2844 = vmatpush3.bf16.msra.mxu1 %v2841_v3  ;;  %v455_v29 = vld [vmem:[#allocation11 + $0x10] sm:$0xff]  ;;  %v2857_v30 = vpack.c.bf16 %v454_v28, %v453_v27  ;;  %v456_v31 = vld [vmem:[#allocation11 + $0x18] sm:$0xff]  ;;  %v2554_v45 = vld [vmem:[#allocation13] ss:$0 sm:$0xff]  ;;  %s3429_s30 = smov [#allocation30]   ;;  %s3430_s27 = smov [#allocation29]  }
 0x153   :  { %2846 = vmatprep.subr.bf16.mxu1 %v2845_v6  ;;  %v2861_v32 = vpack.c.bf16 %v456_v31, %v455_v29  ;;  %s2524_s28 = sshll.u32 %s3429_s30, 4  ;;  %s2512_s9 = sshll.u32 %s3430_s27, 4  ;;  %s2525_s28 = int_to_ptr.vmem [resolvable:$true] %s2524_s28  ;;  %s2513_s9 = int_to_ptr.vmem [resolvable:$true] %s2512_s9 }
 0x154   :  { %2858 = vmatprep.subr.bf16.mxu0 %v2857_v30  ;;  %s3337_s4 = scalar_lea.vmem %s2525_s28, 256  ;;  %p3342_p11 = scmp.lt.s32.totalorder %s2525_s28, %s2525_s28 }
 0x155   :  { %2860 = vmatpush3.bf16.msra.mxu0 %v2857_v30  ;;  %p3338_p10 = scmp.ne.s32.totalorder %s2525_s28, %s3337_s4  ;;  %p3343_p12 = scmp.lt.s32.totalorder %s3337_s4, %s3337_s4 }
 0x156   :  { %2848 = vmatpush3.bf16.msra.mxu1 %v2845_v6  ;;  %2862 = vmatprep.subr.bf16.mxu0 %v2861_v32 }
 0x157   :  { %2850 = vmatprep.subr.bf16.mxu1 %v2849_v9  ;;  %p3344_p13 = por %p3343_p12, %p3342_p11 }
 0x159   :  { %2687 = vmatmul.mubr.msk.f32.vlgmr.msra.gmra.mrb[0].mxu1 %vm283_vm0, %v3778_v12  ;;  %2864 = vmatpush3.bf16.msra.mxu0 %v2861_v32  ;;  %p3345_p0 = pnand %p3344_p13, %p3338_p10 }
 0x15a   :  { %2852 = vmatpush3.bf16.msra.mxu1 %v2849_v9  ;;  %2697 = vmatprep.mubr.msk.f32.mxu1 %vm283_vm0, %v3772_v5 }
 0x15b   :  { %2854 = vmatprep.subr.bf16.mxu1 %v2853_v13  ;;  %2721 = vmatprep.subr.mxu0 %v3422_v14 }
 0x15c   :  { %2709 = vmatmul.mubr.msk.f32.vlgmr.msra.gmra.mrb[0].mxu0 %vm283_vm0, %v3778_v12 }
 0x15d   :  { %2723 = vmatprep.mubr.msk.f32.mxu0 %vm3423_vm1, %v3422_v14 }
 0x15e   :  { %2856 = vmatpush3.bf16.msra.mxu1 %v2853_v13 }
 0x15f   :  { %2711 = vmatprep.subr.mxu1 %v3422_v14 }
 0x161   :  { %2698 = vmatmul.mubr.msk.f32.vlgmr.msra.gmra.mrb[2].mxu1 %vm283_vm0, %v3778_v12 }
 0x162   :  { %2713 = vmatprep.mubr.msk.f32.mxu1 %vm3423_vm1, %v3422_v14 }
 0x22c   :  { %v2688_v15 = vpop.f32.mrb[0].mxu1 }
 0x22d   :  { %v356_v16 = vpop.f32.mrb[1].mxu1  ;;  %v362_v20 = vadd.f32 %v2688_v15, %v2548_v17 }
 0x22e   :  { %v357_v21 = vadd.f32 %v2548_v17, %v356_v16 }
 0x22f   :  { %v3797_v25 = vmul.f32 0.35355338, %v362_v20  ;;  %v2710_v44 = vpop.f32.mrb[0].mxu0 }
 0x230   :  { %v3799_v26 = vmul.f32 0.35355338, %v357_v21  ;;  %v3823_v46 = vadd.f32 %v2710_v44, %v2554_v45  ;;  %v530_v47 = vpop.f32.mrb[1].mxu0 }
 0x231   :  { %v3825_v48 = vadd.f32 %v2554_v45, %v530_v47 }
 0x233   :  { %2722 = vmatpush3.msra.mxu0 %v3825_v48 }
 0x234   :  { %v2699_v19 = vpop.f32.mrb[2].mxu1  ;;  %2731 = vmatprep.subr.mxu0 %v3422_v14 }
 0x235   :  { %v3789_v22 = vadd.f32 %v2699_v19, %v2551_v18  ;;  %v444_v23 = vpop.f32.mrb[3].mxu1 }
 0x236   :  { %v3791_v24 = vadd.f32 %v2551_v18, %v444_v23 }
 0x237   :  { %944 = vrot.lane.b32.xlu1 %v3789_v22, %s3424_s16 }
 0x238   :  { %2712 = vmatpush3.xpose.msk.msra.mxu1 %vm543_vm2, %v3791_v24 }
 0x239   :  { %2716 = vmatprep.subr.mxu1 %v3422_v14 }
 0x23b   :  { %942 = vrot.lane.b32.xlu1 %v3797_v25, %s3424_s16  ;;  %2714 = vmatmul.mubr.msk.f32.vlgmr.msra.gmra.mrb[4].mxu1 %vm543_vm2, %v3799_v26 }
 0x23c   :  { %2717 = vmatpush3.xpose.msk.msra.mxu1 %vm543_vm2, %v3789_v22  ;;  %2718 = vmatprep.mubr.msk.f32.mxu1 %vm3423_vm1, %v3422_v14 }
 0x23d   :  { %2726 = vmatprep.subr.mxu1 %v3422_v14 }
 0x23f   :  { %2719 = vmatmul.mubr.msk.f32.vlgmr.msra.gmra.mrb[6].mxu1 %vm543_vm2, %v3797_v25 }
 0x240   :  { %2728 = vmatprep.mubr.msk.f32.mxu1 %vm3423_vm1, %v3422_v14  ;;  %2727 = vmatpush3.msra.mxu1 %v3823_v46 }
 0x241   :  { %2736 = vmatprep.subr.mxu1 %v3422_v14 }
 0x2a9   :  { %v945_v54 = vpop.permute.xlu1 %944 }
 0x2ad   :  { %v943_v56 = vpop.permute.xlu1 %942 }
 0x30e   :  { %v616_v33 = vpop.f32.mrb[4].mxu1 }
 0x30f   :  { %v2715_v34 = vpop.f32.mrb[5].mxu1  ;;  %v696_v43 = vsel %vm543_vm2, %v616_v33, -inf }
 0x312   :  { %v692_v35 = vpop.f32.mrb[6].mxu1 }
 0x313   :  { %v2720_v36 = vpop.f32.mrb[7].mxu1  ;;  %v699_v37 = vsel %vm543_vm2, %v692_v35, -inf }
 0x314   :  { %700 = vmax.xlane.f32.xlu0 %v699_v37 }
 0x3a1   :  { %v701_v38 = vpop.xlane.xlu0 %700 }
 0x3a2   :  { %v703_v39 = vsub.f32 %v692_v35, %v701_v38 }
 0x3a4   :  { %v706_v40 = vmul.f32 1.442695, %v703_v39 }
 0x3a6   :  { %2923 = vpow2.f32 %v706_v40 }
 0x3b0   :  { %v2924_v41 = vpop.eup %2923 }
 0x3b1   :  { %v711_v42 = vsel %vm543_vm2, %v2924_v41, 0.0 }
 0x3b2   :  { %712 = vadd.xlane.f32.xlu0 %v711_v42 }
 0x3b6   :  { %697 = vmax.xlane.f32.xlu0 %v696_v43 }
 0x3cc   :  { %866 = vrot.lane.b32.xlu0 %v3791_v24, %s3424_s16 }
 0x3d0   :  { %864 = vrot.lane.b32.xlu0 %v3799_v26, %s3424_s16 }
 0x43f   :  { %v713_v49 = vpop.xlane.xlu0 %712 }
 0x440   :  { %2925 = vrcp.f32 %v713_v49  ;;  %v540_v49 = vld [vmem:[#allocation14 + $0x8] sm:$0xff] }
 0x443   :  { %v698_v50 = vpop.xlane.xlu0 %697 }
 0x444   :  { %v702_v51 = vsub.f32 %v616_v33, %v698_v50  ;;  %v539_v50 = vld [vmem:[#allocation14] sm:$0xff] }
 0x446   :  { %v704_v52 = vmul.f32 1.442695, %v702_v51 }
 0x447   :  { %v867_v62 = vpop.permute.xlu0 %866 }
 0x448   :  { %2927 = vpow2.f32 %v704_v52 }
 0x44a   :  { %v2926_v53 = vpop.eup %2925 }
 0x44b   :  { %v3835_v55 = vmul.f32 %v2926_v53, %v2924_v41  ;;  %v865_v0 = vpop.permute.xlu0 %864 }
 0x44d   :  { %2729 = vmatmul.mubr.msk.f32.vlgmr.msra.gmra.mrb[8].mxu1 %vm543_vm2, %v3835_v55 }
 0x44e   :  { %2737 = vmatpush3.xpose.msk.msra.mxu1 %vm543_vm2, %v945_v54  ;;  %2738 = vmatprep.mubr.msk.f32.mxu1 %vm3423_vm1, %v3422_v14 }
 0x44f   :  { %2746 = vmatprep.subr.mxu1 %v3422_v14 }
 0x451   :  { %2739 = vmatmul.mubr.msk.f32.vlgmr.msra.gmra.mrb[10].mxu1 %vm543_vm2, %v943_v56 }
 0x452   :  { %v2928_v57 = vpop.eup %2927  ;;  %2748 = vmatprep.mubr.msk.f32.mxu1 %vm3423_vm1, %v3422_v14 }
 0x453   :  { %v708_v58 = vsel %vm543_vm2, %v2928_v57, 0.0 }
 0x454   :  { %709 = vadd.xlane.f32.xlu1 %v708_v58 }
 0x465   :  { %1120 = vrot.lane.b32.xlu1 %v3823_v46, %s3424_s16 }
 0x469   :  { %1360 = vrot.lane.b32.xlu1 %v3791_v24, %s3425_s0 }
 0x46d   :  { %1438 = vrot.lane.b32.xlu1 %v3789_v22, %s3425_s0 }
 0x4e1   :  { %v710_v59 = vpop.xlane.xlu1 %709 }
 0x4e2   :  { %2929 = vrcp.f32 %v710_v59 }
 0x4e5   :  { %v1121_v60 = vpop.permute.xlu1 %1120 }
 0x4e6   :  { %2747 = vmatpush3.msra.mxu1 %v1121_v60 }
 0x4e7   :  { %2761 = vmatprep.subr.mxu1 %v3422_v14 }
 0x4e9   :  { %v1361_v19 = vpop.permute.xlu1 %1360 }
 0x4ec   :  { %v2930_v61 = vpop.eup %2929 }
 0x4ed   :  { %v3854_v63 = vmul.f32 %v2930_v61, %v2928_v57  ;;  %v1439_v20 = vpop.permute.xlu1 %1438 }
 0x4ef   :  { %2724 = vmatmul.mubr.msk.f32.vlgmr.msra.gmra.mrb[2].mxu0 %vm543_vm2, %v3854_v63 }
 0x4f0   :  { %2732 = vmatpush3.xpose.msk.msra.mxu0 %vm543_vm2, %v867_v62  ;;  %2733 = vmatprep.mubr.msk.f32.mxu0 %vm3423_vm1, %v3422_v14 }
 0x4f1   :  { %2741 = vmatprep.subr.mxu0 %v3422_v14 }
 0x4f3   :  { %2734 = vmatmul.mubr.msk.f32.vlgmr.msra.gmra.mrb[4].mxu0 %vm543_vm2, %v865_v0 }
 0x4f4   :  { %2743 = vmatprep.mubr.msk.f32.mxu0 %vm3423_vm1, %v3422_v14 }
 0x520   :  { %v3865_v1 = vpop.f32.mrb[8].mxu1 }
 0x521   :  { %v2730_v2 = vpop.f32.mrb[9].mxu1 }
 0x524   :  { %v1016_v3 = vpop.f32.mrb[10].mxu1 }
 0x525   :  { %v2740_v4 = vpop.f32.mrb[11].mxu1  ;;  %v1023_v6 = vsel %vm543_vm2, %v1016_v3, -inf }
 0x526   :  { %1024 = vmax.xlane.f32.xlu0 %v1023_v6 }
 0x53c   :  { %1358 = vrot.lane.b32.xlu0 %v3799_v26, %s3425_s0 }
 0x5b3   :  { %v1025_v7 = vpop.xlane.xlu0 %1024 }
 0x5b4   :  { %v1027_v8 = vsub.f32 %v1016_v3, %v1025_v7 }
 0x5b6   :  { %v1030_v9 = vmul.f32 1.442695, %v1027_v8 }
 0x5b7   :  { %v1359_v28 = vpop.permute.xlu0 %1358 }
 0x5b8   :  { %2931 = vpow2.f32 %v1030_v9 }
 0x5c2   :  { %v2932_v10 = vpop.eup %2931  ;;  %v3870_v11 = vpop.f32.mrb[2].mxu0 }
 0x5c3   :  { %v2725_v13 = vpop.f32.mrb[3].mxu0  ;;  %v1035_v15 = vsel %vm543_vm2, %v2932_v10, 0.0 }
 0x5c4   :  { %1036 = vadd.xlane.f32.xlu1 %v1035_v15 }
 0x5c6   :  { %v938_v16 = vpop.f32.mrb[4].mxu0 }
 0x5c7   :  { %v2735_v17 = vpop.f32.mrb[5].mxu0  ;;  %v1020_v18 = vsel %vm543_vm2, %v938_v16, -inf }
 0x5d5   :  { %1436 = vrot.lane.b32.xlu1 %v3797_v25, %s3425_s0 }
 0x5f9   :  { %1021 = vmax.xlane.f32.xlu1 %v1020_v18 }
 0x60a   :  { %1043 = vrot.lane.b32.xlu1 %v3825_v48, %s3424_s16 }
 0x651   :  { %v1037_v21 = vpop.xlane.xlu1 %1036 }
 0x652   :  { %2933 = vrcp.f32 %v1037_v21 }
 0x655   :  { %v1437_v29 = vpop.permute.xlu1 %1436 }
 0x65c   :  { %v2934_v23 = vpop.eup %2933 }
 0x65d   :  { %v3878_v27 = vmul.f32 %v2934_v23, %v2932_v10 }
 0x65f   :  { %2749 = vmatmul.mubr.msk.f32.vlgmr.msra.gmra.mrb[12].mxu1 %vm543_vm2, %v3878_v27 }
 0x660   :  { %2762 = vmatpush3.xpose.msk.msra.mxu1 %vm543_vm2, %v1361_v19  ;;  %2763 = vmatprep.mubr.msk.f32.mxu1 %vm3423_vm1, %v3422_v14 }
 0x661   :  { %2766 = vmatprep.subr.mxu1 %v3422_v14 }
 0x663   :  { %2764 = vmatmul.mubr.msk.f32.vlgmr.msra.gmra.mrb[14].mxu1 %vm543_vm2, %v1359_v28 }
 0x664   :  { %2767 = vmatpush3.xpose.msk.msra.mxu1 %vm543_vm2, %v1439_v20  ;;  %2768 = vmatprep.mubr.msk.f32.mxu1 %vm3423_vm1, %v3422_v14 }
 0x665   :  { %2776 = vmatprep.subr.mxu1 %v3422_v14 }
 0x667   :  { %2769 = vmatmul.mubr.msk.f32.vlgmr.msra.gmra.mrb[16].mxu1 %vm543_vm2, %v1437_v29 }
 0x668   :  { %2778 = vmatprep.mubr.msk.f32.mxu1 %vm3423_vm1, %v3422_v14 }
 0x686   :  { %v1022_v30 = vpop.xlane.xlu1 %1021 }
 0x687   :  { %v1026_v31 = vsub.f32 %v938_v16, %v1022_v30 }
 0x689   :  { %v1028_v32 = vmul.f32 1.442695, %v1026_v31 }
 0x68a   :  { %v1044_v33 = vpop.permute.xlu1 %1043 }
 0x68b   :  { %2935 = vpow2.f32 %v1028_v32  ;;  %2742 = vmatpush3.msra.mxu0 %v1044_v33 }
 0x68c   :  { %2751 = vmatprep.subr.mxu0 %v540_v49 }
 0x695   :  { %v2936_v34 = vpop.eup %2935 }
 0x696   :  { %v1032_v35 = vsel %vm543_vm2, %v2936_v34, 0.0 }
 0x697   :  { %1033 = vadd.xlane.f32.xlu0 %v1032_v35 }
 0x724   :  { %v1034_v36 = vpop.xlane.xlu0 %1033 }
 0x725   :  { %2937 = vrcp.f32 %v1034_v36 }
 0x72f   :  { %v2938_v37 = vpop.eup %2937 }
 0x730   :  { %v3895_v38 = vmul.f32 %v2938_v37, %v2936_v34 }
 0x732   :  { %2744 = vmatmul.mubr.msk.f32.vlgmr.msra.gmra.mrb[6].mxu0 %vm543_vm2, %v3895_v38  ;;  %v1192_v39 = vpop.f32.mrb[12].mxu1 }
 0x733   :  { %v2750_v40 = vpop.f32.mrb[13].mxu1  ;;  %2752 = vmatpush3.msra.mxu0 %v540_v49 }
 0x734   :  { %2756 = vmatprep.subr.mxu0 %v539_v50 }
 0x736   :  { %v1432_v41 = vpop.f32.mrb[14].mxu1 }
 0x737   :  { %v2765_v42 = vpop.f32.mrb[15].mxu1  ;;  %v1514_v43 = vsel %vm543_vm2, %v1432_v41, -inf }
 0x738   :  { %1515 = vmax.xlane.f32.xlu0 %v1514_v43 }
 0x73a   :  { %v1510_v44 = vpop.f32.mrb[16].mxu1 }
 0x73b   :  { %v2770_v45 = vpop.f32.mrb[17].mxu1  ;;  %v1517_v47 = vsel %vm543_vm2, %v1510_v44, -inf }
 0x73c   :  { %1518 = vmax.xlane.f32.xlu0 %v1517_v47  ;;  %v542_v45 = vld [vmem:[#allocation14 + $0x18] sm:$0xff] }
 0x7c5   :  { %v1516_v51 = vpop.xlane.xlu0 %1515 }
 0x7c6   :  { %v1520_v52 = vsub.f32 %v1432_v41, %v1516_v51  ;;  %v2589_v51 = vld [vmem:[#allocation16] ss:$0 sm:$0xff] }
 0x7c8   :  { %v1522_v53 = vmul.f32 1.442695, %v1520_v52 }
 0x7c9   :  { %v1519_v54 = vpop.xlane.xlu0 %1518 }
 0x7ca   :  { %2939 = vpow2.f32 %v1522_v53  ;;  %v1521_v56 = vsub.f32 %v1510_v44, %v1519_v54 }
 0x7cc   :  { %v1524_v57 = vmul.f32 1.442695, %v1521_v56 }
 0x7ce   :  { %2941 = vpow2.f32 %v1524_v57 }
 0x7d4   :  { %v2940_v58 = vpop.eup %2939 }
 0x7d5   :  { %v1526_v59 = vsel %vm543_vm2, %v2940_v58, 0.0 }
 0x7d6   :  { %1527 = vadd.xlane.f32.xlu0 %v1526_v59 }
 0x7d8   :  { %v2942_v60 = vpop.eup %2941 }
 0x7d9   :  { %v1529_v61 = vsel %vm543_vm2, %v2942_v60, 0.0 }
 0x7da   :  { %1530 = vadd.xlane.f32.xlu1 %v1529_v61 }
 0x7eb   :  { %1771 = vrot.lane.b32.xlu1 %v3799_v26, %s3426_s3 }
 0x7ec   :  { %1536 = vrot.lane.b32.xlu0 %v3825_v48, %s3425_s0 }
 0x7f0   :  { %1612 = vrot.lane.b32.xlu0 %v3823_v46, %s3425_s0 }
 0x7f4   :  { %1773 = vrot.lane.b32.xlu0 %v3791_v24, %s3426_s3  ;;  %v541_v24 = vld [vmem:[#allocation14 + $0x10] sm:$0xff] }
 0x7f8   :  { %1851 = vrot.lane.b32.xlu0 %v3789_v22, %s3426_s3 }
 0x7fc   :  { %1849 = vrot.lane.b32.xlu0 %v3797_v25, %s3426_s3 }
 0x805   :  { %v1115_v62 = vpop.f32.mrb[6].mxu0 }
 0x806   :  { %v2745_v0 = vpop.f32.mrb[7].mxu0  ;;  %2753 = vmatprep.mubr.msk.f32.mxu0 %vm543_vm2, %v1115_v62 }
 0x807   :  { %2754 = vmatmul.mubr.msk.f32.vlgmr.msra.gmra.mrb[8].mxu0 %vm543_vm2, %v1192_v39 }
 0x808   :  { %2758 = vmatprep.mubr.msk.f32.mxu0 %vm543_vm2, %v3870_v11  ;;  %2757 = vmatpush3.msra.mxu0 %v539_v50 }
 0x809   :  { %2771 = vmatprep.subr.mxu0 %v3422_v14 }
 0x80f   :  { %2759 = vmatmul.mubr.msk.f32.vlgmr.msra.gmra.mrb[8].mxu0 %vm543_vm2, %v3865_v1 }
 0x810   :  { %2773 = vmatprep.mubr.msk.f32.mxu0 %vm3423_vm1, %v3422_v14 }
 0x863   :  { %v1528_v22 = vpop.xlane.xlu0 %1527 }
 0x864   :  { %2943 = vrcp.f32 %v1528_v22 }
 0x867   :  { %v1531_v25 = vpop.xlane.xlu1 %1530  ;;  %v1537_v26 = vpop.permute.xlu0 %1536 }
 0x868   :  { %2945 = vrcp.f32 %v1531_v25  ;;  %2772 = vmatpush3.msra.mxu0 %v1537_v26 }
 0x869   :  { %2781 = vmatprep.subr.mxu0 %v541_v24 }
 0x86b   :  { %v1613_v2 = vpop.permute.xlu0 %1612  ;;  %v1772_v8 = vpop.permute.xlu1 %1771 }
 0x86c   :  { %2777 = vmatpush3.msra.mxu1 %v1613_v2 }
 0x86d   :  { %2786 = vmatprep.subr.mxu1 %v3422_v14 }
 0x86e   :  { %v2944_v3 = vpop.eup %2943 }
 0x86f   :  { %v3925_v4 = vmul.f32 %v2944_v3, %v2940_v58  ;;  %v1774_v7 = vpop.permute.xlu0 %1773 }
 0x871   :  { %2774 = vmatmul.mubr.msk.f32.vlgmr.msra.gmra.mrb[10].mxu0 %vm543_vm2, %v3925_v4 }
 0x872   :  { %v2946_v1 = vpop.eup %2945  ;;  %2782 = vmatpush3.msra.mxu0 %v541_v24 }
 0x873   :  { %v3929_v6 = vmul.f32 %v2946_v1, %v2942_v60  ;;  %2791 = vmatprep.subr.mxu0 %v3422_v14  ;;  %v1852_v11 = vpop.permute.xlu0 %1851  ;;  %v2269_v1 = vld [vmem:[#allocation20 + $0x8] sm:$0xff] }
 0x875   :  { %2779 = vmatmul.mubr.msk.f32.vlgmr.msra.gmra.mrb[18].mxu1 %vm543_vm2, %v3929_v6 }
 0x876   :  { %2787 = vmatpush3.xpose.msk.msra.mxu1 %vm543_vm2, %v1774_v7  ;;  %2788 = vmatprep.mubr.msk.f32.mxu1 %vm3423_vm1, %v3422_v14 }
 0x877   :  { %2796 = vmatprep.subr.mxu1 %v3422_v14  ;;  %v1850_v16 = vpop.permute.xlu0 %1849 }
 0x879   :  { %2789 = vmatmul.mubr.msk.f32.vlgmr.msra.gmra.mrb[20].mxu1 %vm543_vm2, %v1772_v8  ;;  %v2270_v8 = vld [vmem:[#allocation20 + $0x10] sm:$0xff] }
 0x87a   :  { %2798 = vmatprep.mubr.msk.f32.mxu1 %vm3423_vm1, %v3422_v14 }
 0x944   :  { %v1608_v9 = vpop.f32.mrb[10].mxu0 }
 0x945   :  { %v2775_v10 = vpop.f32.mrb[11].mxu0  ;;  %2783 = vmatprep.mubr.msk.f32.mxu0 %vm543_vm2, %v1608_v9  ;;  %v2271_v9 = vld [vmem:[#allocation20 + $0x18] sm:$0xff] }
 0x946   :  { %v2869_v10 = vpack.c.bf16 %v2271_v9, %v2270_v8 }
 0x948   :  { %v1684_v13 = vpop.f32.mrb[18].mxu1 }
 0x949   :  { %v2780_v15 = vpop.f32.mrb[19].mxu1  ;;  %2784 = vmatmul.mubr.msk.f32.vlgmr.msra.gmra.mrb[8].mxu0 %vm543_vm2, %v1684_v13  ;;  %v2363_v13 = vld [vmem:[#allocation23 + $0x8] sm:$0xff] }
 0x94a   :  { %2792 = vmatpush3.xpose.msk.msra.mxu0 %vm543_vm2, %v1852_v11  ;;  %2793 = vmatprep.mubr.msk.f32.mxu0 %vm3423_vm1, %v3422_v14  ;;  %v2362_v11 = vld [vmem:[#allocation23] sm:$0xff]  ;;  %v2364_v15 = vld [vmem:[#allocation23 + $0x10] sm:$0xff] }
 0x94b   :  { %2801 = vmatprep.subr.mxu0 %v3422_v14 }
 0x94c   :  { %v1845_v17 = vpop.f32.mrb[20].mxu1 }
 0x94d   :  { %v2790_v18 = vpop.f32.mrb[21].mxu1  ;;  %2794 = vmatmul.mubr.msk.f32.vlgmr.msra.gmra.mrb[12].mxu0 %vm543_vm2, %v1850_v16  ;;  %v1927_v19 = vsel %vm543_vm2, %v1845_v17, -inf  ;;  %v2873_v16 = vpack.c.bf16 %v2363_v13, %v2362_v11 }
 0x94e   :  { %1928 = vmax.xlane.f32.xlu0 %v1927_v19  ;;  %2803 = vmatprep.mubr.msk.f32.mxu0 %vm3423_vm1, %v3422_v14  ;;  %v2366_v19 = vld [vmem:[#allocation23 + $0x20] sm:$0xff] }
 0x9db   :  { %v1929_v20 = vpop.xlane.xlu0 %1928 }
 0x9dc   :  { %v1933_v21 = vsub.f32 %v1845_v17, %v1929_v20  ;;  %v2365_v17 = vld [vmem:[#allocation23 + $0x18] sm:$0xff]  ;;  %v2367_v20 = vld [vmem:[#allocation23 + $0x28] sm:$0xff] }
 0x9dd   :  { %v2877_v18 = vpack.c.bf16 %v2365_v17, %v2364_v15 }
 0x9de   :  { %v1935_v23 = vmul.f32 1.442695, %v1933_v21  ;;  %v2881_v21 = vpack.c.bf16 %v2367_v20, %v2366_v19 }
 0x9e0   :  { %2947 = vpow2.f32 %v1935_v23 }
 0x9ea   :  { %v2948_v28 = vpop.eup %2947 }
 0x9eb   :  { %v1939_v29 = vsel %vm543_vm2, %v2948_v28, 0.0 }
 0x9ec   :  { %1940 = vadd.xlane.f32.xlu0 %v1939_v29 }
 0xa20   :  { %v1923_v30 = vpop.f32.mrb[12].mxu0 }
 0xa21   :  { %v2795_v31 = vpop.f32.mrb[13].mxu0  ;;  %v1930_v32 = vsel %vm543_vm2, %v1923_v30, -inf }
 0xa22   :  { %1931 = vmax.xlane.f32.xlu1 %v1930_v32 }
 0xa33   :  { %2025 = vrot.lane.b32.xlu1 %v3823_v46, %s3426_s3 }
 0xa79   :  { %v1941_v39 = vpop.xlane.xlu0 %1940 }
 0xaaf   :  { %v1932_v33 = vpop.xlane.xlu1 %1931 }
 0xab0   :  { %v1934_v34 = vsub.f32 %v1923_v30, %v1932_v33 }
 0xab2   :  { %v1937_v35 = vmul.f32 1.442695, %v1934_v34  ;;  %v2590_v34 = vld [vmem:[#allocation17] ss:$0 sm:$0xff] }
 0xab3   :  { %v2026_v14 = vpop.permute.xlu1 %2025 }
 0xab4   :  { %2949 = vpow2.f32 %v1937_v35  ;;  %2802 = vmatpush3.msra.mxu0 %v2026_v14  ;;  %v2591_v14 = vld [vmem:[#allocation19] ss:$0 sm:$0xff] }
 0xab5   :  { %2951 = vrcp.f32 %v1941_v39  ;;  %2806 = vmatprep.subr.mxu0 %v542_v45 }
 0xabe   :  { %v2950_v36 = vpop.eup %2949 }
 0xabf   :  { %v1942_v37 = vsel %vm543_vm2, %v2950_v36, 0.0  ;;  %v2952_v41 = vpop.eup %2951 }
 0xac0   :  { %1943 = vadd.xlane.f32.xlu0 %v1942_v37  ;;  %v3958_v42 = vmul.f32 %v2952_v41, %v2948_v28 }
 0xad6   :  { %1949 = vrot.lane.b32.xlu0 %v3825_v48, %s3426_s3 }
 0xb4d   :  { %v1944_v40 = vpop.xlane.xlu0 %1943 }
 0xb4e   :  { %2953 = vrcp.f32 %v1944_v40 }
 0xb51   :  { %v1950_v46 = vpop.permute.xlu0 %1949 }
 0xb52   :  { %2797 = vmatpush3.msra.mxu1 %v1950_v46 }
 0xb53   :  { %2799 = vmatmul.mubr.msk.f32.vlgmr.msra.gmra.mrb[22].mxu1 %vm543_vm2, %v3958_v42 }
 0xb58   :  { %v2954_v43 = vpop.eup %2953 }
 0xb59   :  { %v3962_v44 = vmul.f32 %v2954_v43, %v2950_v36  ;;  %v2368_v43 = vld [vmem:[#allocation23 + $0x30] sm:$0xff] }
 0xb5b   :  { %2804 = vmatmul.mubr.msk.f32.vlgmr.msra.gmra.mrb[14].mxu0 %vm543_vm2, %v3962_v44 }
 0xb5c   :  { %2807 = vmatpush3.msra.mxu0 %v542_v45  ;;  %v2369_v45 = vld [vmem:[#allocation23 + $0x38] sm:$0xff] }
 0xb5d   :  { %2874 = vmatprep.subr.bf16.mxu0 %v2873_v16 }
 0xc26   :  { %v2021_v48 = vpop.f32.mrb[22].mxu1 }
 0xc27   :  { %v2800_v47 = vpop.f32.mrb[23].mxu1  ;;  %2808 = vmatprep.mubr.msk.f32.mxu0 %vm543_vm2, %v2021_v48  ;;  %v2885_v48 = vpack.c.bf16 %v2369_v45, %v2368_v43 }
 0xc28   :  { %v2592_v47 = vld [vmem:[#allocation22] ss:$0 sm:$0xff] }
 0xc2e   :  { %v2097_v49 = vpop.f32.mrb[14].mxu0 }
 0xc2f   :  { %v2805_v50 = vpop.f32.mrb[15].mxu0  ;;  %2809 = vmatmul.mubr.msk.f32.vlgmr.msra.gmra.mrb[8].mxu0 %vm543_vm2, %v2097_v49 }
 0xc30   :  { %2876 = vmatpush3.bf16.msra.mxu0 %v2873_v16 }
 0xc31   :  { %2878 = vmatprep.subr.bf16.mxu0 %v2877_v18 }
 0xc34   :  { %2880 = vmatpush3.bf16.msra.mxu0 %v2877_v18 }
 0xc35   :  { %2882 = vmatprep.subr.bf16.mxu0 %v2881_v21 }
 0xc38   :  { %2884 = vmatpush3.bf16.msra.mxu0 %v2881_v21  ;;  %v2598_v21 = vld [vmem:[#allocation26] ss:$0 sm:$0xff] }
 0xc39   :  { %2886 = vmatprep.subr.bf16.mxu0 %v2885_v48 }
 0xc3c   :  { %2888 = vmatpush3.bf16.msra.mxu0 %v2885_v48 }
 0xd02   :  { %v2810_v52 = vpop.f32.mrb[8].mxu0 }
 0xd03   :  { %v2220_v53 = vadd.f32 %v2810_v52, %v2589_v51  ;;  %v2173_v54 = vpop.f32.mrb[9].mxu0 }
 0xd04   :  { %v2219_v56 = vadd.f32 %v2589_v51, %v2173_v54 }
 0xd05   :  { %v2222_v57 = vadd.f32 %v2220_v53, %v3778_v12 }
 0xd06   :  { %v2221_v58 = vadd.f32 %v2219_v56, %v3772_v5  ;;  %v2268_v5 = vld [vmem:[#allocation20] sm:$0xff] }
 0xd07   :  { %v2228_v59 = vsel %vm283_vm0, %v2222_v57, 0.0  ;;  %v2865_v7 = vpack.c.bf16 %v2269_v1, %v2268_v5  ;;  %v2595_v56 = vld [vmem:[#allocation25] ss:$0 sm:$0xff] }
 0xd08   :  { %2229 = vadd.xlane.f32.xlu1 %v2228_v59  ;;  %v2225_v60 = vsel %vm283_vm0, %v2221_v58, 0.0 }
 0xd09   :  { %2226 = vadd.xlane.f32.xlu0 %v2225_v60  ;;  %2866 = vmatprep.subr.bf16.mxu1 %v2865_v7 }
 0xd0a   :  { %2868 = vmatpush3.bf16.msra.mxu1 %v2865_v7 }
 0xd0b   :  { %2870 = vmatprep.subr.bf16.mxu1 %v2869_v10 }
 0xd0e   :  { %2872 = vmatpush3.bf16.msra.mxu1 %v2869_v10 }
 0xd95   :  { %v2230_v61 = vpop.xlane.xlu1 %2229 }
 0xd96   :  { %v2233_v62 = vmul.f32 0.03125, %v2230_v61  ;;  %v2227_v0 = vpop.xlane.xlu0 %2226 }
 0xd97   :  { %v2232_v22 = vmul.f32 0.03125, %v2227_v0 }
 0xd98   :  { %v2235_v24 = vsub.f32 %v2222_v57, %v2233_v62 }
 0xd99   :  { %v2234_v25 = vsub.f32 %v2221_v58, %v2232_v22 }
 0xd9a   :  { %v2237_v3 = vmul.f32 %v2235_v24, %v2235_v24 }
 0xd9b   :  { %v2236_v26 = vmul.f32 %v2234_v25, %v2234_v25 }
 0xd9c   :  { %v2241_v12 = vsel %vm283_vm0, %v2237_v3, 0.0 }
 0xd9d   :  { %v2238_v2 = vsel %vm283_vm0, %v2236_v26, 0.0 }
 0xd9e   :  { %2239 = vadd.xlane.f32.xlu0 %v2238_v2 }
 0xda2   :  { %2242 = vadd.xlane.f32.xlu0 %v2241_v12 }
 0xe2b   :  { %v2240_v23 = vpop.xlane.xlu0 %2239 }
 0xe2c   :  { %v2244_v28 = vmul.f32 0.03125, %v2240_v23 }
 0xe2e   :  { %v2246_v29 = vadd.f32 1e-05, %v2244_v28 }
 0xe2f   :  { %v2243_v30 = vpop.xlane.xlu0 %2242 }
 0xe30   :  { %2955 = vrsqrt.f32 %v2246_v29  ;;  %v2245_v31 = vmul.f32 0.03125, %v2243_v30 }
 0xe32   :  { %v2247_v32 = vadd.f32 1e-05, %v2245_v31  ;;  %v2599_v31 = vld [vmem:[#allocation28] ss:$0 sm:$0xff] }
 0xe34   :  { %2957 = vrsqrt.f32 %v2247_v32 }
 0xe3a   :  { %v2956_v33 = vpop.eup %2955 }
 0xe3b   :  { %v2250_v35 = vmul.f32 %v2956_v33, %v2234_v25 }
 0xe3d   :  { %v2258_v36 = vmul.f32 %v2590_v34, %v2250_v35 }
 0xe3e   :  { %v2958_v37 = vpop.eup %2957 }
 0xe3f   :  { %v2251_v39 = vmul.f32 %v2958_v37, %v2235_v24  ;;  %v2266_v40 = vadd.f32 %v2591_v14, %v2258_v36 }
 0xe41   :  { %v2259_v41 = vmul.f32 %v2590_v34, %v2251_v39  ;;  %2819 = vmatprep.mubr.msk.f32.mxu1 %vm283_vm0, %v2266_v40 }
 0xe43   :  { %v2267_v46 = vadd.f32 %v2591_v14, %v2259_v41 }
 0xe45   :  { %2820 = vmatmul.mubr.msk.f32.vlgmr.msra.gmra.mrb[24].mxu1 %vm283_vm0, %v2267_v46 }
 0xf18   :  { %v2821_v49 = vpop.f32.mrb[24].mxu1 }
 0xf19   :  { %v2357_v50 = vadd.f32 %v2821_v49, %v2592_v47  ;;  %v2351_v51 = vpop.f32.mrb[25].mxu1 }
 0xf1a   :  { %v2352_v52 = vadd.f32 %v2592_v47, %v2351_v51 }
 0xf1b   :  { %v2361_v54 = vmax.f32 %v2357_v50, 0.0 }
 0xf1c   :  { %v2360_v53 = vmax.f32 %v2352_v52, 0.0 }
 0xf1e   :  { %2838 = vmatprep.mubr.msk.f32.mxu0 %vm2377_vm3, %v2360_v53 }
 0xf1f   :  { %2839 = vmatmul.mubr.msk.f32.vlgmr.msra.gmra.mrb[16].mxu0 %vm2377_vm3, %v2361_v54 }
 0xff2   :  { %v2840_v57 = vpop.f32.mrb[16].mxu0 }
 0xff3   :  { %v2456_v58 = vadd.f32 %v2840_v57, %v2595_v56  ;;  %v2450_v59 = vpop.f32.mrb[17].mxu0 }
 0xff4   :  { %v2451_v60 = vadd.f32 %v2595_v56, %v2450_v59 }
 0xff5   :  { %v2460_v61 = vadd.f32 %v2456_v58, %v2267_v46 }
 0xff6   :  { %v2459_v62 = vadd.f32 %v2451_v60, %v2266_v40 }
 0xff7   :  { %v2466_v0 = vsel %vm283_vm0, %v2460_v61, 0.0 }
 0xff8   :  { %2467 = vadd.xlane.f32.xlu1 %v2466_v0  ;;  %v2463_v22 = vsel %vm283_vm0, %v2459_v62, 0.0 }
 0xff9   :  { %2464 = vadd.xlane.f32.xlu0 %v2463_v22 }
0x1085   :  { %v2468_v24 = vpop.xlane.xlu1 %2467 }
0x1086   :  { %v2470_v25 = vmul.f32 0.03125, %v2468_v24  ;;  %v2465_v26 = vpop.xlane.xlu0 %2464 }
0x1087   :  { %v2469_v2 = vmul.f32 0.03125, %v2465_v26 }
0x1088   :  { %v2472_v3 = vsub.f32 %v2460_v61, %v2470_v25 }
0x1089   :  { %v2471_v12 = vsub.f32 %v2459_v62, %v2469_v2 }
0x108a   :  { %v2474_v5 = vmul.f32 %v2472_v3, %v2472_v3 }
0x108b   :  { %v2473_v1 = vmul.f32 %v2471_v12, %v2471_v12 }
0x108c   :  { %v2478_v7 = vsel %vm283_vm0, %v2474_v5, 0.0 }
0x108d   :  { %2479 = vadd.xlane.f32.xlu1 %v2478_v7  ;;  %v2475_v8 = vsel %vm283_vm0, %v2473_v1, 0.0 }
0x108e   :  { %2476 = vadd.xlane.f32.xlu0 %v2475_v8 }
0x109e   :  { %2186 = vrot.lane.b32.xlu1 %v3878_v27, %s3406_s26 }
0x10a2   :  { %2190 = vrot.lane.b32.xlu1 %v3925_v4, %s3427_s11 }
0x10a4   :  { %2184 = vrot.lane.b32.xlu0 %v3895_v38, %s3406_s26 }
0x10a6   :  { %2192 = vrot.lane.b32.xlu1 %v3929_v6, %s3427_s11 }
0x10a8   :  { %2196 = vrot.lane.b32.xlu0 %v3958_v42, %s3428_s5 }
0x10aa   :  { %2198 = vrot.lane.b32.xlu1 %v3962_v44, %s3428_s5 }
0x111a   :  { %v2480_v9 = vpop.xlane.xlu1 %2479 }
0x111b   :  { %v2482_v10 = vmul.f32 0.03125, %v2480_v9  ;;  %v2477_v11 = vpop.xlane.xlu0 %2476 }
0x111c   :  { %v2481_v13 = vmul.f32 0.03125, %v2477_v11 }
0x111d   :  { %v2484_v15 = vadd.f32 1e-05, %v2482_v10 }
0x111e   :  { %v2483_v16 = vadd.f32 1e-05, %v2481_v13  ;;  %v2187_v27 = vpop.permute.xlu1 %2186 }
0x111f   :  { %2959 = vrsqrt.f32 %v2484_v15  ;;  %v2185_v17 = vpop.permute.xlu0 %2184  ;;  %v2203_v20 = vsel %vm543_vm2, %v3835_v55, %v2187_v27 }
0x1120   :  { %2961 = vrsqrt.f32 %v2483_v16  ;;  %v2202_v38 = vsel %vm543_vm2, %v3854_v63, %v2185_v17 }
0x1122   :  { %v2191_v4 = vpop.permute.xlu1 %2190 }
0x1123   :  { %v2205_v6 = vsel %vm2204_vm4, %v2202_v38, %v2191_v4  ;;  %v2197_v42 = vpop.permute.xlu0 %2196 }
0x1124   :  { %v2208_v44 = vsel %vm2207_vm5, %v2205_v6, %v2197_v42 }
0x1125   :  { %2210 = vst.msk [vmem:[#allocation30] sm:$0xff] %vm283_vm0, %v2208_v44 }
0x1126   :  { %v2193_v18 = vpop.permute.xlu1 %2192 }
0x1127   :  { %v2206_v28 = vsel %vm2204_vm4, %v2203_v20, %v2193_v18 }
0x1129   :  { %v2960_v19 = vpop.eup %2959 }
0x112a   :  { %v2962_v23 = vpop.eup %2961  ;;  %v2199_v29 = vpop.permute.xlu1 %2198  ;;  %v2488_v30 = vmul.f32 %v2960_v19, %v2472_v3 }
0x112b   :  { %v2209_v63 = vsel %vm2207_vm5, %v2206_v28, %v2199_v29  ;;  %v2487_v32 = vmul.f32 %v2962_v23, %v2471_v12 }
0x112c   :  { %2211 = vst.msk [vmem:[#allocation30 + $0x8] sm:$0xff] %vm283_vm0, %v2209_v63  ;;  %v2496_v33 = vmul.f32 %v2598_v21, %v2488_v30 }
0x112d   :  { %v2495_v34 = vmul.f32 %v2598_v21, %v2487_v32 }
0x112e   :  { %3348 = shalt.err (!%p3345_p0)
}
0x112f   :  { %s3349_s8 = scalar_lea.hbm %s4046_s18, 256 }
0x1130   :  { %p3350_p1 = scmp.ne.s32.totalorder %s4046_s18, %s3349_s8  ;;  %p3353_p2 = scmp.lt.u32.totalorder %s3349_s8, %s4046_s18 }
0x1132   :  { %p3355_p3 = pnand %p3353_p2, %p3350_p1 }
0x1134   :  { %3358 = shalt.err (!%p3355_p3)
}
0x1135   :  { %2530 = dma.vmem_to_hbm [thread:$0]  %s2525_s28, 256, %s4046_s18, [#allocation31], %s3405_s25, %s3405_s25, %s3406_s26   ;;  %v2504_v55 = vadd.f32 %v2599_v31, %v2496_v33  ;;  %v2503_v35 = vadd.f32 %v2599_v31, %v2495_v34 }
0x1136   :  { %s3359_s13 = scalar_lea.vmem %s2513_s9, 256  ;;  %p3364_p5 = scmp.lt.s32.totalorder %s2513_s9, %s2513_s9 }
0x1137   :  { %2506 = vst.msk [vmem:[#allocation29 + $0x8] sm:$0xff] %vm283_vm0, %v2504_v55  ;;  %2505 = vst.msk [vmem:[#allocation29] sm:$0xff] %vm283_vm0, %v2503_v35  ;;  %p3360_p4 = scmp.ne.s32.totalorder %s2513_s9, %s3359_s13  ;;  %p3365_p6 = scmp.lt.s32.totalorder %s3359_s13, %s3359_s13 }
0x1139   :  { %p3366_p7 = por %p3365_p6, %p3364_p5 }
0x113b   :  { %p3367_p8 = pnand %p3366_p7, %p3360_p4 }
0x113d   :  { %3370 = shalt.err (!%p3367_p8)
}
0x113e   :  { %s4058_s6 = sld [smem:[#allocation46_spill]] }
0x1144   :  { %s3371_s17 = scalar_lea.hbm %s4058_s6, 256 }
0x1145   :  { %p3372_p9 = scmp.ne.s32.totalorder %s4058_s6, %s3371_s17  ;;  %p3375_p10 = scmp.lt.u32.totalorder %s3371_s17, %s4058_s6 }
0x1147   :  { %p3377_p11 = pnand %p3375_p10, %p3372_p9 }
0x1149   :  { %3380 = shalt.err (!%p3377_p11)
}
0x114a   :  { %2518 = dma.vmem_to_hbm [thread:$0]  %s2513_s9, 256, %s4058_s6, [#allocation4], %s3405_s25, %s3405_s25, %s3406_s26  }
0x114b   :  { %3399 = dma.done.wait [#allocation4], 256  }
0x114c   :  { %3400 = vsyncadd [#allocation4], 4294967040 }
0x114d   :  { %3401 = dma.done.wait [#allocation31], 256  }
0x114e   :  { %3402 = vsyncadd [#allocation31], 4294967040 }
0x114f   :  { %2537 = vsyncpa [#allocation3], 1 }
0x1150   :  { %2538 = vsyncpa [#allocation6], 1 }
0x1151   :  { %2539 = vsyncpa [#allocation9], 1 }
0x1152   :  { %2540 = vsyncpa [#allocation12], 1 }
0x1153   :  { %2541 = vsyncpa [#allocation15], 1 }
0x1154   :  { %2542 = vsyncpa [#allocation18], 1 }
0x1155   :  { %2543 = vsyncpa [#allocation21], 1 }
0x1156   :  { %2544 = vsyncpa [#allocation24], 1 }
0x1157   :  { %2545 = vsyncpa [#allocation27], 1 }
0x1158   :  { %2546 = vsyncpa [#allocation4], 1 }
0x1159   :  { %2547 = vsyncpa [#allocation31], 1 }

</bundles_post_ra>
